<compile_context>
chip_gen: v7x
topology: tpu7x:2x2x1
jax: 0.10.0
libtpu: 0.0.40
codegen_flags: <defaults>
</compile_context>

<pallas_src>
import functools

import jax
import jax.numpy as jnp
import numpy as np
from jax import lax
from jax.experimental import pallas as pl
from jax.experimental.pallas import tpu as pltpu

LANE = 128


def _round_up(a, b):
    return (a + b - 1) // b * b


def _sublane(dtype):
    """Sublane packing multiple: 8 for f32, 16 for bf16, 32 for int8/fp8."""
    return max(8, 32 // jnp.dtype(dtype).itemsize)


def _mha_head_kernel(xq_ref, xkv_ref, wq_ref, bq_ref, wkv_ref, bkv_ref,
                     o_ref, q_scr, m_scr, l_scr, acc_scr, kv_scr,
                     *, e_pad, tk, s_valid, s_pad, cache_kv):
    """Fused projections + flash attention. Grid = (batch, q_tile, kv_tile)."""
    i = pl.program_id(1)
    j = pl.program_id(2)

    @pl.when(j == 0)
    def _init():
        # Q projection for this query tile (emb_dim**-0.5 already folded into wq/bq).
        q = jnp.dot(xq_ref[...], wq_ref[...],
                    preferred_element_type=jnp.float32) + bq_ref[...]
        q_scr[...] = q.astype(q_scr.dtype)
        m_scr[...] = jnp.full_like(m_scr, -jnp.inf)
        l_scr[...] = jnp.zeros_like(l_scr)
        acc_scr[...] = jnp.zeros_like(acc_scr)

    if cache_kv:
        # Project each KV tile exactly once per batch (on the first q-tile visit),
        # cache the projected (tk, 2*e_pad) tile in VMEM scratch and re-use it for
        # all subsequent q tiles -> no redundant projection MXU work.
        @pl.when(i == 0)
        def _project_kv():
            kv_new = jnp.dot(xkv_ref[...], wkv_ref[...],
                             preferred_element_type=jnp.float32) + bkv_ref[...]
            kv_scr[j] = kv_new.astype(kv_scr.dtype)
        kv = kv_scr[j]
    else:
        # Streaming fallback (long S): fused K|V projection, one wide MXU matmul.
        kv = (jnp.dot(xkv_ref[...], wkv_ref[...],
                      preferred_element_type=jnp.float32)
              + bkv_ref[...]).astype(xkv_ref.dtype)

    k = kv[:, :e_pad]
    v = kv[:, e_pad:]

    # q @ k^T by contracting the embedding axes directly (no materialized k.T).
    s = lax.dot_general(q_scr[...], k, (((1,), (1,)), ((), ())),
                        preferred_element_type=jnp.float32)          # (tq, tk)

    if s_pad != s_valid:
        # Sequence was padded: mask out-of-range KV columns before the softmax so the
        # bias-only padded rows (k = bk, v = bv) cannot corrupt the result.
        col = j * tk + lax.broadcasted_iota(jnp.int32, s.shape, 1)
        s = jnp.where(col < s_valid, s, -jnp.inf)

    # Online softmax (f32 running max / denominator / accumulator).
    m_prev = m_scr[...]
    m_new = jnp.maximum(m_prev, jnp.max(s, axis=-1, keepdims=True))
    alpha = jnp.exp(m_prev - m_new)
    p = jnp.exp(s - m_new)
    l_scr[...] = alpha * l_scr[...] + jnp.sum(p, axis=-1, keepdims=True)
    acc_scr[...] = alpha * acc_scr[...] + jnp.dot(
        p.astype(v.dtype), v, preferred_element_type=jnp.float32)
    m_scr[...] = m_new

    @pl.when(j == pl.num_programs(2) - 1)
    def _finalize():
        # EUP approx reciprocal + one Newton step -> ~f32 accuracy, cheap on VALU.
        l = l_scr[...]
        r = pl.reciprocal(l, approx=True)
        r = r * (2.0 - l * r)
        o_ref[...] = (acc_scr[...] * r).astype(o_ref.dtype)


def mha_head(x, wq, bq, wk, bk, wv, bv, *, tq_target=512, tk_target=1024,
             compute_dtype=None, kv_cache_vmem_budget=8 << 20):
    """x: (B, S, E); w*: torch-layout (E_out, E_in); b*: (E,).

    compute_dtype: dtype for the MXU matmuls (pass jnp.bfloat16 on v6e/v7x for the
    fast MXU rate; defaults to x.dtype). Softmax math is always f32.
    """
    assert tk_target >= tq_target
    B, S, E = x.shape
    compute_dtype = jnp.dtype(compute_dtype) if compute_dtype is not None else jnp.dtype(x.dtype)
    dsize = compute_dtype.itemsize
    sub = _sublane(compute_dtype)
    e_pad = _round_up(E, LANE)                       # lane-dense embedding width

    # --- tile selection -------------------------------------------------------
    tq = min(_round_up(tq_target, sub), _round_up(S, sub))
    # Megacore (v7x: 2 TensorCores sharded over the "parallel" grid axes): make sure
    # there are at least 2 parallel grid iterations whenever S allows it.
    if B * pl.cdiv(S, tq) < 2 and S > sub:
        tq = min(tq, _round_up(pl.cdiv(S, 2), sub))
    tk = min(_round_up(tk_target, sub), _round_up(S, sub))
    tk = max(tq, (tk // tq) * tq)                    # multiple of tq -> one padded S
    s_pad = _round_up(S, tk)                         # divisible by both tq and tk
    n_q, n_kv = s_pad // tq, s_pad // tk
    grid = (B, n_q, n_kv)

    # Cache projected KV tiles in VMEM scratch when they fit; otherwise stream.
    kv_cache_bytes = s_pad * 2 * e_pad * dsize
    cache_kv = kv_cache_bytes <= kv_cache_vmem_budget
    n_kv_cached = n_kv if cache_kv else 1

    # --- parameter prep (scale folded into Wq/bq; pad to lane-dense e_pad) -----
    scale = float(E) ** -0.5

    def prep_w(w, s=1.0):
        w = (w.astype(jnp.float32) * s).T            # torch (E_out, E_in) -> x @ W
        return jnp.pad(w, ((0, e_pad - E), (0, e_pad - E))).astype(compute_dtype)

    def prep_b(b, s=1.0):
        return jnp.pad(b.astype(jnp.float32) * s, (0, e_pad - E))   # keep biases f32

    wq_p = prep_w(wq, scale)
    bq_p = prep_b(bq, scale).reshape(1, e_pad)
    wkv_p = jnp.concatenate([prep_w(wk), prep_w(wv)], axis=1)       # (e_pad, 2*e_pad)
    bkv_p = jnp.concatenate([prep_b(bk), prep_b(bv)]).reshape(1, 2 * e_pad)
    x_p = jnp.pad(x, ((0, 0), (0, s_pad - S), (0, e_pad - E))).astype(compute_dtype)

    # --- VMEM budget (explicit, sized from the footprint + double buffers) -----
    est = (2 * tq * e_pad * dsize                    # x (Q rows) block, double-buffered
           + 2 * tk * e_pad * dsize                  # x (KV rows) block, double-buffered
           + 2 * tq * e_pad * x.dtype.itemsize       # output block, double-buffered
           + 3 * e_pad * e_pad * dsize + 3 * e_pad * 4   # constant weights + biases
           + tq * e_pad * dsize                      # q scratch
           + 2 * tq * 4                              # m, l scratch
           + tq * e_pad * 4                          # f32 accumulator
           + n_kv_cached * tk * 2 * e_pad * dsize    # KV cache scratch
           + 4 * tq * tk * 4)                        # live f32 s/p intermediates
    vmem_limit = int(max(16 << 20, min(2 * est + (2 << 20), 56 << 20)))

    # --- cost estimate so XLA schedules surrounding ops sensibly ---------------
    proj_kv_steps = n_kv if cache_kv else n_q * n_kv
    flops = (2 * B * n_q * tq * e_pad * e_pad                   # Q projection
             + 4 * B * proj_kv_steps * tk * e_pad * e_pad       # fused K|V projection
             + 4 * B * n_q * n_kv * tq * tk * e_pad)            # QK^T + PV
    transcendentals = B * n_q * n_kv * tq * (tk + 1)
    bytes_accessed = (dsize * B * s_pad * e_pad * (1 + n_q)     # x for Q + KV re-stream
                      + x.dtype.itemsize * B * s_pad * e_pad    # output
                      + dsize * 3 * e_pad * e_pad)              # weights
    cost = pl.CostEstimate(flops=int(flops), transcendentals=int(transcendentals),
                           bytes_accessed=int(bytes_accessed))

    kernel = functools.partial(_mha_head_kernel, e_pad=e_pad, tk=tk,
                               s_valid=S, s_pad=s_pad, cache_kv=cache_kv)

    def _const_spec(shape, single_buffered):
        idx = lambda b, i, j: (0, 0)
        if single_buffered:
            # Constant operands (index_map always (0,0)): double-buffering them is
            # pure VMEM waste -> single buffer.
            return pl.BlockSpec(shape, idx, pipeline_mode=pl.Buffered(1))
        return pl.BlockSpec(shape, idx)

    def _run(single_buffer_consts):
        in_specs = [
            pl.BlockSpec((None, tq, e_pad), lambda b, i, j: (b, i, 0)),   # x (Q rows)
            pl.BlockSpec((None, tk, e_pad), lambda b, i, j: (b, j, 0)),   # x (KV rows)
            _const_spec((e_pad, e_pad), single_buffer_consts),            # Wq * scale
            _const_spec((1, e_pad), single_buffer_consts),                # bq * scale
            _const_spec((e_pad, 2 * e_pad), single_buffer_consts),        # Wk | Wv
            _const_spec((1, 2 * e_pad), single_buffer_consts),            # bk | bv
        ]
        return pl.pallas_call(
            kernel,
            out_shape=jax.ShapeDtypeStruct((B, s_pad, e_pad), x.dtype),
            grid_spec=pltpu.PrefetchScalarGridSpec(
                num_scalar_prefetch=0,
                grid=grid,
                in_specs=in_specs,
                out_specs=pl.BlockSpec((None, tq, e_pad), lambda b, i, j: (b, i, 0)),
                scratch_shapes=[
                    pltpu.VMEM((tq, e_pad), compute_dtype),       # q tile
                    pltpu.VMEM((tq, 1), jnp.float32),             # running max
                    pltpu.VMEM((tq, 1), jnp.float32),             # running denominator
                    pltpu.VMEM((tq, e_pad), jnp.float32),         # output accumulator
                    pltpu.VMEM((n_kv_cached, tk, 2 * e_pad), compute_dtype),  # KV cache
                ],
            ),
            compiler_params=pltpu.CompilerParams(
                dimension_semantics=("parallel", "parallel", "arbitrary"),
                vmem_limit_bytes=vmem_limit),
            cost_estimate=cost,
        )(x_p, x_p, wq_p, bq_p, wkv_p, bkv_p)

    try:
        out = _run(True)
    except Exception:
        # pipeline_mode=pl.Buffered(1) not supported on this jax build -> fall back
        # to default double-buffered constants (only costs VMEM, still correct).
        out = _run(False)

    return out[:, :S, :E]


def mha_head_ref(x, wq, bq, wk, bk, wv, bv):
    """Pure-JAX reference mirroring the PyTorch forward (eval, self-attention)."""
    E = x.shape[-1]
    q = x @ wq.T + bq
    k = x @ wk.T + bk
    v = x @ wv.T + bv
    scores = jnp.einsum("bqe,bke->bqk", q, k) * (E ** -0.5)
    attn = jax.nn.softmax(scores, axis=-1)
    return jnp.einsum("bqk,bke->bqe", attn, v)


if __name__ == "__main__":
    B, E = 2, 32

    key = jax.random.PRNGKey(0)
    kx1, kx2, kwq, kbq, kwk, kbk, kwv, kbv = jax.random.split(key, 8)

    # Deterministic parameter init (PyTorch-style uniform(-1/sqrt(E), 1/sqrt(E))).
    bound = 1.0 / np.sqrt(E)
    init = lambda k, shape: jax.random.uniform(k, shape, jnp.float32, -bound, bound)
    params = (init(kwq, (E, E)), init(kbq, (E,)),
              init(kwk, (E, E)), init(kbk, (E,)),
              init(kwv, (E, E)), init(kbv, (E,)))

    # Case 1: S=8, default tile targets (single tile per axis, cached-KV path).
    x1 = jax.random.normal(kx1, (B, 8, E), dtype=jnp.float32)
    out1 = jax.block_until_ready(mha_head(x1, *params))
    np.testing.assert_allclose(np.asarray(out1), np.asarray(mha_head_ref(x1, *params)),
                               rtol=1e-5, atol=1e-5)

    # Case 2: S=12 with tiny tiles -> multi-tile grid, sequence padding + -inf
    # column masking, cached-KV path.
    x2 = jax.random.normal(kx2, (B, 12, E), dtype=jnp.float32)
    out2 = jax.block_until_ready(mha_head(x2, *params, tq_target=8, tk_target=8))
    np.testing.assert_allclose(np.asarray(out2), np.asarray(mha_head_ref(x2, *params)),
                               rtol=1e-5, atol=1e-5)

    # Case 3: same shapes, streaming (non-cached) K|V projection fallback path.
    out3 = jax.block_until_ready(
        mha_head(x2, *params, tq_target=8, tk_target=8, kv_cache_vmem_budget=0))
    np.testing.assert_allclose(np.asarray(out3), np.asarray(mha_head_ref(x2, *params)),
                               rtol=1e-5, atol=1e-5)

    print("KERNEL_OK")
</pallas_src>

<mosaic_0001>
module attributes {stable_mosaic.version = 11 : i64} {
  func.func @_mha_head_kernel(%arg0: i32, %arg1: i32, %arg2: i32, %arg3: memref<1x8x128xf32, #tpu.memory_space<vmem>>, %arg4: memref<1x8x128xf32, #tpu.memory_space<vmem>>, %arg5: memref<128x128xf32, #tpu.memory_space<vmem>>, %arg6: memref<1x128xf32, #tpu.memory_space<vmem>>, %arg7: memref<128x256xf32, #tpu.memory_space<vmem>>, %arg8: memref<1x256xf32, #tpu.memory_space<vmem>>, %arg9: memref<1x8x128xf32, #tpu.memory_space<vmem>>, %arg10: memref<8x128xf32, #tpu.memory_space<vmem>>, %arg11: memref<8x1xf32, #tpu.memory_space<vmem>>, %arg12: memref<8x1xf32, #tpu.memory_space<vmem>>, %arg13: memref<8x128xf32, #tpu.memory_space<vmem>>, %arg14: memref<1x8x256xf32, #tpu.memory_space<vmem>>) attributes {dimension_semantics = [#tpu.dimension_semantics<parallel>, #tpu.dimension_semantics<parallel>, #tpu.dimension_semantics<arbitrary>], iteration_bounds = array<i64: 2, 1, 1>, scalar_prefetch = 0 : i64, scratch_operands = 5 : i64, tpu.core_type = #tpu.core_type<tc>, window_params = [{transform_indices = @transform_0, window_bounds = array<i64: 1, 8, 128>}, {transform_indices = @transform_1, window_bounds = array<i64: 1, 8, 128>}, {pipeline_mode = #tpu.pipeline_mode<synchronous>, transform_indices = @transform_2, window_bounds = array<i64: 128, 128>}, {pipeline_mode = #tpu.pipeline_mode<synchronous>, transform_indices = @transform_3, window_bounds = array<i64: 1, 128>}, {pipeline_mode = #tpu.pipeline_mode<synchronous>, transform_indices = @transform_4, window_bounds = array<i64: 128, 256>}, {pipeline_mode = #tpu.pipeline_mode<synchronous>, transform_indices = @transform_5, window_bounds = array<i64: 1, 256>}, {transform_indices = @transform_6, window_bounds = array<i64: 1, 8, 128>}]} {
    %c0_i32 = arith.constant 0 : i32
    %0 = arith.cmpi eq, %arg2, %c0_i32 : i32
    %1 = arith.extui %0 : i1 to i32
    %c0_i32_0 = arith.constant 0 : i32
    %2 = arith.cmpi ne, %1, %c0_i32_0 : i32
    scf.if %2 {
      %c0_23 = arith.constant 0 : index
      %c0_24 = arith.constant 0 : index
      %c0_25 = arith.constant 0 : index
      %38 = vector.load %arg3[%c0_23, %c0_24, %c0_25] : memref<1x8x128xf32, #tpu.memory_space<vmem>>, vector<1x8x128xf32>
      %39 = vector.shape_cast %38 : vector<1x8x128xf32> to vector<8x128xf32>
      %c0_26 = arith.constant 0 : index
      %c0_27 = arith.constant 0 : index
      %40 = vector.load %arg5[%c0_26, %c0_27] : memref<128x128xf32, #tpu.memory_space<vmem>>, vector<128x128xf32>
      %cst_28 = arith.constant dense<0.000000e+00> : vector<8x128xf32>
      %41 = tpu.matmul %39, %40, %cst_28 {dimension_numbers = #tpu.dot_dimension_numbers<[1], [0], [0], [1], [0, 0, 1, 1], [], []>} : vector<8x128xf32>, vector<128x128xf32>, vector<8x128xf32> -> vector<8x128xf32>
      %c0_29 = arith.constant 0 : index
      %c0_30 = arith.constant 0 : index
      %42 = vector.load %arg6[%c0_29, %c0_30] : memref<1x128xf32, #tpu.memory_space<vmem>>, vector<1x128xf32>
      %43 = vector.broadcast %42 : vector<1x128xf32> to vector<8x128xf32>
      %44 = arith.addf %41, %43 : vector<8x128xf32>
      %c0_31 = arith.constant 0 : index
      %c0_32 = arith.constant 0 : index
      %45 = vector.load %arg10[%c0_31, %c0_32] : memref<8x128xf32, #tpu.memory_space<vmem>>, vector<8x128xf32>
      tpu.vector_store %arg10[%c0_31, %c0_32], %44 {strides = array<i32>} : memref<8x128xf32, #tpu.memory_space<vmem>>, vector<8x128xf32>,
      %cst_33 = arith.constant 0xFF800000 : f32
      %46 = vector.broadcast %cst_33 : f32 to vector<8x1xf32>
      %c0_34 = arith.constant 0 : index
      %c0_35 = arith.constant 0 : index
      %47 = vector.load %arg11[%c0_34, %c0_35] : memref<8x1xf32, #tpu.memory_space<vmem>>, vector<8x1xf32>
      tpu.vector_store %arg11[%c0_34, %c0_35], %46 {strides = array<i32>} : memref<8x1xf32, #tpu.memory_space<vmem>>, vector<8x1xf32>,
      %cst_36 = arith.constant 0.000000e+00 : f32
      %48 = vector.broadcast %cst_36 : f32 to vector<8x1xf32>
      %c0_37 = arith.constant 0 : index
      %c0_38 = arith.constant 0 : index
      %49 = vector.load %arg12[%c0_37, %c0_38] : memref<8x1xf32, #tpu.memory_space<vmem>>, vector<8x1xf32>
      tpu.vector_store %arg12[%c0_37, %c0_38], %48 {strides = array<i32>} : memref<8x1xf32, #tpu.memory_space<vmem>>, vector<8x1xf32>,
      %cst_39 = arith.constant 0.000000e+00 : f32
      %50 = vector.broadcast %cst_39 : f32 to vector<8x128xf32>
      %c0_40 = arith.constant 0 : index
      %c0_41 = arith.constant 0 : index
      %51 = vector.load %arg13[%c0_40, %c0_41] : memref<8x128xf32, #tpu.memory_space<vmem>>, vector<8x128xf32>
      tpu.vector_store %arg13[%c0_40, %c0_41], %50 {strides = array<i32>} : memref<8x128xf32, #tpu.memory_space<vmem>>, vector<8x128xf32>,
    } else {
    }
    %c0_i32_1 = arith.constant 0 : i32
    %3 = arith.cmpi eq, %arg1, %c0_i32_1 : i32
    %4 = arith.extui %3 : i1 to i32
    %c0_i32_2 = arith.constant 0 : i32
    %5 = arith.cmpi ne, %4, %c0_i32_2 : i32
    scf.if %5 {
      %c0_23 = arith.constant 0 : index
      %c0_24 = arith.constant 0 : index
      %c0_25 = arith.constant 0 : index
      %38 = vector.load %arg4[%c0_23, %c0_24, %c0_25] : memref<1x8x128xf32, #tpu.memory_space<vmem>>, vector<1x8x128xf32>
      %39 = vector.shape_cast %38 : vector<1x8x128xf32> to vector<8x128xf32>
      %c0_26 = arith.constant 0 : index
      %c0_27 = arith.constant 0 : index
      %40 = vector.load %arg7[%c0_26, %c0_27] : memref<128x256xf32, #tpu.memory_space<vmem>>, vector<128x256xf32>
      %cst_28 = arith.constant dense<0.000000e+00> : vector<8x256xf32>
      %41 = tpu.matmul %39, %40, %cst_28 {dimension_numbers = #tpu.dot_dimension_numbers<[1], [0], [0], [1], [0, 0, 1, 1], [], []>} : vector<8x128xf32>, vector<128x256xf32>, vector<8x256xf32> -> vector<8x256xf32>
      %c0_29 = arith.constant 0 : index
      %c0_30 = arith.constant 0 : index
      %42 = vector.load %arg8[%c0_29, %c0_30] : memref<1x256xf32, #tpu.memory_space<vmem>>, vector<1x256xf32>
      %43 = vector.broadcast %42 : vector<1x256xf32> to vector<8x256xf32>
      %44 = arith.addf %41, %43 : vector<8x256xf32>
      %45 = arith.index_cast %arg2 : i32 to index
      %c0_31 = arith.constant 0 : index
      %c0_32 = arith.constant 0 : index
      %46 = vector.load %arg14[%45, %c0_31, %c0_32] : memref<1x8x256xf32, #tpu.memory_space<vmem>>, vector<1x8x256xf32>
      %47 = vector.shape_cast %46 : vector<1x8x256xf32> to vector<8x256xf32>
      %48 = vector.shape_cast %44 : vector<8x256xf32> to vector<1x8x256xf32>
      tpu.vector_store %arg14[%45, %c0_31, %c0_32], %48 {strides = array<i32>} : memref<1x8x256xf32, #tpu.memory_space<vmem>>, vector<1x8x256xf32>,
    } else {
    }
    %6 = arith.index_cast %arg2 : i32 to index
    %c0 = arith.constant 0 : index
    %c0_3 = arith.constant 0 : index
    %7 = vector.load %arg14[%6, %c0, %c0_3] : memref<1x8x256xf32, #tpu.memory_space<vmem>>, vector<1x8x256xf32>
    %8 = vector.shape_cast %7 : vector<1x8x256xf32> to vector<8x256xf32>
    %9 = vector.extract_strided_slice %8 {offsets = [0, 0], sizes = [8, 128], strides = [1, 1]} : vector<8x256xf32> to vector<8x128xf32>
    %10 = vector.extract_strided_slice %8 {offsets = [0, 128], sizes = [8, 128], strides = [1, 1]} : vector<8x256xf32> to vector<8x128xf32>
    %c0_4 = arith.constant 0 : index
    %c0_5 = arith.constant 0 : index
    %11 = vector.load %arg10[%c0_4, %c0_5] : memref<8x128xf32, #tpu.memory_space<vmem>>, vector<8x128xf32>
    %cst = arith.constant dense<0.000000e+00> : vector<8x8xf32>
    %12 = tpu.matmul %11, %9, %cst {dimension_numbers = #tpu.dot_dimension_numbers<[1], [1], [0], [0], [0, 0, 1, 0], [], []>} : vector<8x128xf32>, vector<8x128xf32>, vector<8x8xf32> -> vector<8x8xf32>
    %c0_6 = arith.constant 0 : index
    %c0_7 = arith.constant 0 : index
    %13 = vector.load %arg11[%c0_6, %c0_7] : memref<8x1xf32, #tpu.memory_space<vmem>>, vector<8x1xf32>
    %cst_8 = arith.constant dense<0xFF800000> : vector<8xf32>
    %14 = vector.multi_reduction <maximumf>, %12, %cst_8 [1] : vector<8x8xf32> to vector<8xf32>
    %15 = vector.shape_cast %14 : vector<8xf32> to vector<8x1xf32>
    %16 = arith.maximumf %13, %15 : vector<8x1xf32>
    %17 = arith.subf %13, %16 : vector<8x1xf32>
    %18 = math.exp %17 : vector<8x1xf32>
    %19 = vector.broadcast %16 : vector<8x1xf32> to vector<8x8xf32>
    %20 = arith.subf %12, %19 : vector<8x8xf32>
    %21 = math.exp %20 : vector<8x8xf32>
    %c0_9 = arith.constant 0 : index
    %c0_10 = arith.constant 0 : index
    %22 = vector.load %arg12[%c0_9, %c0_10] : memref<8x1xf32, #tpu.memory_space<vmem>>, vector<8x1xf32>
    %23 = arith.mulf %18, %22 : vector<8x1xf32>
    %cst_11 = arith.constant dense<0.000000e+00> : vector<8xf32>
    %24 = vector.multi_reduction <add>, %21, %cst_11 [1] : vector<8x8xf32> to vector<8xf32>
    %25 = vector.shape_cast %24 : vector<8xf32> to vector<8x1xf32>
    %26 = arith.addf %23, %25 : vector<8x1xf32>
    %c0_12 = arith.constant 0 : index
    %c0_13 = arith.constant 0 : index
    %27 = vector.load %arg12[%c0_12, %c0_13] : memref<8x1xf32, #tpu.memory_space<vmem>>, vector<8x1xf32>
    tpu.vector_store %arg12[%c0_12, %c0_13], %26 {strides = array<i32>} : memref<8x1xf32, #tpu.memory_space<vmem>>, vector<8x1xf32>,
    %c0_14 = arith.constant 0 : index
    %c0_15 = arith.constant 0 : index
    %28 = vector.load %arg13[%c0_14, %c0_15] : memref<8x128xf32, #tpu.memory_space<vmem>>, vector<8x128xf32>
    %29 = vector.broadcast %18 : vector<8x1xf32> to vector<8x128xf32>
    %30 = arith.mulf %29, %28 : vector<8x128xf32>
    %cst_16 = arith.constant dense<0.000000e+00> : vector<8x128xf32>
    %31 = tpu.matmul %21, %10, %cst_16 {dimension_numbers = #tpu.dot_dimension_numbers<[1], [0], [0], [1], [0, 0, 1, 1], [], []>} : vector<8x8xf32>, vector<8x128xf32>, vector<8x128xf32> -> vector<8x128xf32>
    %32 = arith.addf %30, %31 : vector<8x128xf32>
    %c0_17 = arith.constant 0 : index
    %c0_18 = arith.constant 0 : index
    %33 = vector.load %arg13[%c0_17, %c0_18] : memref<8x128xf32, #tpu.memory_space<vmem>>, vector<8x128xf32>
    tpu.vector_store %arg13[%c0_17, %c0_18], %32 {strides = array<i32>} : memref<8x128xf32, #tpu.memory_space<vmem>>, vector<8x128xf32>,
    %c0_19 = arith.constant 0 : index
    %c0_20 = arith.constant 0 : index
    %34 = vector.load %arg11[%c0_19, %c0_20] : memref<8x1xf32, #tpu.memory_space<vmem>>, vector<8x1xf32>
    tpu.vector_store %arg11[%c0_19, %c0_20], %16 {strides = array<i32>} : memref<8x1xf32, #tpu.memory_space<vmem>>, vector<8x1xf32>,
    %c0_i32_21 = arith.constant 0 : i32
    %35 = arith.cmpi eq, %arg2, %c0_i32_21 : i32
    %36 = arith.extui %35 : i1 to i32
    %c0_i32_22 = arith.constant 0 : i32
    %37 = arith.cmpi ne, %36, %c0_i32_22 : i32
    scf.if %37 {
      %c0_23 = arith.constant 0 : index
      %c0_24 = arith.constant 0 : index
      %38 = vector.load %arg12[%c0_23, %c0_24] : memref<8x1xf32, #tpu.memory_space<vmem>>, vector<8x1xf32>
      %39 = tpu.reciprocal %38 {approx = true} : vector<8x1xf32> -> vector<8x1xf32>
      %40 = arith.mulf %38, %39 : vector<8x1xf32>
      %cst_25 = arith.constant 2.000000e+00 : f32
      %41 = vector.broadcast %cst_25 : f32 to vector<8x1xf32>
      %42 = arith.subf %41, %40 : vector<8x1xf32>
      %43 = arith.mulf %39, %42 : vector<8x1xf32>
      %c0_26 = arith.constant 0 : index
      %c0_27 = arith.constant 0 : index
      %44 = vector.load %arg13[%c0_26, %c0_27] : memref<8x128xf32, #tpu.memory_space<vmem>>, vector<8x128xf32>
      %45 = vector.broadcast %43 : vector<8x1xf32> to vector<8x128xf32>
      %46 = arith.mulf %44, %45 : vector<8x128xf32>
      %c0_28 = arith.constant 0 : index
      %c0_29 = arith.constant 0 : index
      %c0_30 = arith.constant 0 : index
      %47 = vector.load %arg9[%c0_28, %c0_29, %c0_30] : memref<1x8x128xf32, #tpu.memory_space<vmem>>, vector<1x8x128xf32>
      %48 = vector.shape_cast %47 : vector<1x8x128xf32> to vector<8x128xf32>
      %49 = vector.shape_cast %46 : vector<8x128xf32> to vector<1x8x128xf32>
      tpu.vector_store %arg9[%c0_28, %c0_29, %c0_30], %49 {strides = array<i32>} : memref<1x8x128xf32, #tpu.memory_space<vmem>>, vector<1x8x128xf32>,
    } else {
    }
    return
  }
  func.func @transform_0(%arg0: i32, %arg1: i32, %arg2: i32) -> (i32, i32, i32) {
    %c0_i32 = arith.constant 0 : i32
    %c0_i32_0 = arith.constant 0 : i32
    return %arg0, %arg1, %c0_i32 : i32, i32, i32
  }
  func.func @transform_1(%arg0: i32, %arg1: i32, %arg2: i32) -> (i32, i32, i32) {
    %c0_i32 = arith.constant 0 : i32
    %c0_i32_0 = arith.constant 0 : i32
    return %arg0, %arg2, %c0_i32 : i32, i32, i32
  }
  func.func @transform_2(%arg0: i32, %arg1: i32, %arg2: i32) -> (i32, i32) {
    %c0_i32 = arith.constant 0 : i32
    %c0_i32_0 = arith.constant 0 : i32
    %c0_i32_1 = arith.constant 0 : i32
    return %c0_i32, %c0_i32_0 : i32, i32
  }
  func.func @transform_3(%arg0: i32, %arg1: i32, %arg2: i32) -> (i32, i32) {
    %c0_i32 = arith.constant 0 : i32
    %c0_i32_0 = arith.constant 0 : i32
    %c0_i32_1 = arith.constant 0 : i32
    return %c0_i32, %c0_i32_0 : i32, i32
  }
  func.func @transform_4(%arg0: i32, %arg1: i32, %arg2: i32) -> (i32, i32) {
    %c0_i32 = arith.constant 0 : i32
    %c0_i32_0 = arith.constant 0 : i32
    %c0_i32_1 = arith.constant 0 : i32
    return %c0_i32, %c0_i32_0 : i32, i32
  }
  func.func @transform_5(%arg0: i32, %arg1: i32, %arg2: i32) -> (i32, i32) {
    %c0_i32 = arith.constant 0 : i32
    %c0_i32_0 = arith.constant 0 : i32
    %c0_i32_1 = arith.constant 0 : i32
    return %c0_i32, %c0_i32_0 : i32, i32
  }
  func.func @transform_6(%arg0: i32, %arg1: i32, %arg2: i32) -> (i32, i32, i32) {
    %c0_i32 = arith.constant 0 : i32
    %c0_i32_0 = arith.constant 0 : i32
    return %arg0, %arg1, %c0_i32 : i32, i32, i32
  }
}

module attributes {stable_mosaic.version = 11 : i64} {
  func.func @_mha_head_kernel(%arg0: i32, %arg1: i32, %arg2: i32, %arg3: memref<1x8x128xf32, #tpu.memory_space<vmem>>, %arg4: memref<1x8x128xf32, #tpu.memory_space<vmem>>, %arg5: memref<128x128xf32, #tpu.memory_space<vmem>>, %arg6: memref<1x128xf32, #tpu.memory_space<vmem>>, %arg7: memref<128x256xf32, #tpu.memory_space<vmem>>, %arg8: memref<1x256xf32, #tpu.memory_space<vmem>>, %arg9: memref<1x8x128xf32, #tpu.memory_space<vmem>>, %arg10: memref<8x128xf32, #tpu.memory_space<vmem>>, %arg11: memref<8x1xf32, #tpu.memory_space<vmem>>, %arg12: memref<8x1xf32, #tpu.memory_space<vmem>>, %arg13: memref<8x128xf32, #tpu.memory_space<vmem>>, %arg14: memref<1x8x256xf32, #tpu.memory_space<vmem>>) attributes {dimension_semantics = [#tpu.dimension_semantics<parallel>, #tpu.dimension_semantics<parallel>, #tpu.dimension_semantics<arbitrary>], iteration_bounds = array<i64: 2, 1, 1>, scalar_prefetch = 0 : i64, scratch_operands = 5 : i64, tpu.core_type = #tpu.core_type<tc>, window_params = [{transform_indices = @transform_0, window_bounds = array<i64: 1, 8, 128>}, {transform_indices = @transform_1, window_bounds = array<i64: 1, 8, 128>}, {pipeline_mode = #tpu.pipeline_mode<synchronous>, transform_indices = @transform_2, window_bounds = array<i64: 128, 128>}, {pipeline_mode = #tpu.pipeline_mode<synchronous>, transform_indices = @transform_3, window_bounds = array<i64: 1, 128>}, {pipeline_mode = #tpu.pipeline_mode<synchronous>, transform_indices = @transform_4, window_bounds = array<i64: 128, 256>}, {pipeline_mode = #tpu.pipeline_mode<synchronous>, transform_indices = @transform_5, window_bounds = array<i64: 1, 256>}, {transform_indices = @transform_6, window_bounds = array<i64: 1, 8, 128>}]} {
    %c0_i32 = arith.constant 0 : i32
    %0 = arith.cmpi eq, %arg2, %c0_i32 : i32
    %1 = arith.extui %0 : i1 to i32
    %c0_i32_0 = arith.constant 0 : i32
    %2 = arith.cmpi ne, %1, %c0_i32_0 : i32
    scf.if %2 {
      %c0_23 = arith.constant 0 : index
      %c0_24 = arith.constant 0 : index
      %c0_25 = arith.constant 0 : index
      %38 = vector.load %arg3[%c0_23, %c0_24, %c0_25] : memref<1x8x128xf32, #tpu.memory_space<vmem>>, vector<1x8x128xf32>
      %39 = vector.shape_cast %38 : vector<1x8x128xf32> to vector<8x128xf32>
      %c0_26 = arith.constant 0 : index
      %c0_27 = arith.constant 0 : index
      %40 = vector.load %arg5[%c0_26, %c0_27] : memref<128x128xf32, #tpu.memory_space<vmem>>, vector<128x128xf32>
      %cst_28 = arith.constant dense<0.000000e+00> : vector<8x128xf32>
      %41 = tpu.matmul %39, %40, %cst_28 {dimension_numbers = #tpu.dot_dimension_numbers<[1], [0], [0], [1], [0, 0, 1, 1], [], []>} : vector<8x128xf32>, vector<128x128xf32>, vector<8x128xf32> -> vector<8x128xf32>
      %c0_29 = arith.constant 0 : index
      %c0_30 = arith.constant 0 : index
      %42 = vector.load %arg6[%c0_29, %c0_30] : memref<1x128xf32, #tpu.memory_space<vmem>>, vector<1x128xf32>
      %43 = vector.broadcast %42 : vector<1x128xf32> to vector<8x128xf32>
      %44 = arith.addf %41, %43 : vector<8x128xf32>
      %c0_31 = arith.constant 0 : index
      %c0_32 = arith.constant 0 : index
      %45 = vector.load %arg10[%c0_31, %c0_32] : memref<8x128xf32, #tpu.memory_space<vmem>>, vector<8x128xf32>
      tpu.vector_store %arg10[%c0_31, %c0_32], %44 {strides = array<i32>} : memref<8x128xf32, #tpu.memory_space<vmem>>, vector<8x128xf32>,
      %cst_33 = arith.constant 0xFF800000 : f32
      %46 = vector.broadcast %cst_33 : f32 to vector<8x1xf32>
      %c0_34 = arith.constant 0 : index
      %c0_35 = arith.constant 0 : index
      %47 = vector.load %arg11[%c0_34, %c0_35] : memref<8x1xf32, #tpu.memory_space<vmem>>, vector<8x1xf32>
      tpu.vector_store %arg11[%c0_34, %c0_35], %46 {strides = array<i32>} : memref<8x1xf32, #tpu.memory_space<vmem>>, vector<8x1xf32>,
      %cst_36 = arith.constant 0.000000e+00 : f32
      %48 = vector.broadcast %cst_36 : f32 to vector<8x1xf32>
      %c0_37 = arith.constant 0 : index
      %c0_38 = arith.constant 0 : index
      %49 = vector.load %arg12[%c0_37, %c0_38] : memref<8x1xf32, #tpu.memory_space<vmem>>, vector<8x1xf32>
      tpu.vector_store %arg12[%c0_37, %c0_38], %48 {strides = array<i32>} : memref<8x1xf32, #tpu.memory_space<vmem>>, vector<8x1xf32>,
      %cst_39 = arith.constant 0.000000e+00 : f32
      %50 = vector.broadcast %cst_39 : f32 to vector<8x128xf32>
      %c0_40 = arith.constant 0 : index
      %c0_41 = arith.constant 0 : index
      %51 = vector.load %arg13[%c0_40, %c0_41] : memref<8x128xf32, #tpu.memory_space<vmem>>, vector<8x128xf32>
      tpu.vector_store %arg13[%c0_40, %c0_41], %50 {strides = array<i32>} : memref<8x128xf32, #tpu.memory_space<vmem>>, vector<8x128xf32>,
    } else {
    }
    %c0_i32_1 = arith.constant 0 : i32
    %3 = arith.cmpi eq, %arg1, %c0_i32_1 : i32
    %4 = arith.extui %3 : i1 to i32
    %c0_i32_2 = arith.constant 0 : i32
    %5 = arith.cmpi ne, %4, %c0_i32_2 : i32
    scf.if %5 {
      %c0_23 = arith.constant 0 : index
      %c0_24 = arith.constant 0 : index
      %c0_25 = arith.constant 0 : index
      %38 = vector.load %arg4[%c0_23, %c0_24, %c0_25] : memref<1x8x128xf32, #tpu.memory_space<vmem>>, vector<1x8x128xf32>
      %39 = vector.shape_cast %38 : vector<1x8x128xf32> to vector<8x128xf32>
      %c0_26 = arith.constant 0 : index
      %c0_27 = arith.constant 0 : index
      %40 = vector.load %arg7[%c0_26, %c0_27] : memref<128x256xf32, #tpu.memory_space<vmem>>, vector<128x256xf32>
      %cst_28 = arith.constant dense<0.000000e+00> : vector<8x256xf32>
      %41 = tpu.matmul %39, %40, %cst_28 {dimension_numbers = #tpu.dot_dimension_numbers<[1], [0], [0], [1], [0, 0, 1, 1], [], []>} : vector<8x128xf32>, vector<128x256xf32>, vector<8x256xf32> -> vector<8x256xf32>
      %c0_29 = arith.constant 0 : index
      %c0_30 = arith.constant 0 : index
      %42 = vector.load %arg8[%c0_29, %c0_30] : memref<1x256xf32, #tpu.memory_space<vmem>>, vector<1x256xf32>
      %43 = vector.broadcast %42 : vector<1x256xf32> to vector<8x256xf32>
      %44 = arith.addf %41, %43 : vector<8x256xf32>
      %45 = arith.index_cast %arg2 : i32 to index
      %c0_31 = arith.constant 0 : index
      %c0_32 = arith.constant 0 : index
      %46 = vector.load %arg14[%45, %c0_31, %c0_32] : memref<1x8x256xf32, #tpu.memory_space<vmem>>, vector<1x8x256xf32>
      %47 = vector.shape_cast %46 : vector<1x8x256xf32> to vector<8x256xf32>
      %48 = vector.shape_cast %44 : vector<8x256xf32> to vector<1x8x256xf32>
      tpu.vector_store %arg14[%45, %c0_31, %c0_32], %48 {strides = array<i32>} : memref<1x8x256xf32, #tpu.memory_space<vmem>>, vector<1x8x256xf32>,
    } else {
    }
    %6 = arith.index_cast %arg2 : i32 to index
    %c0 = arith.constant 0 : index
    %c0_3 = arith.constant 0 : index
    %7 = vector.load %arg14[%6, %c0, %c0_3] : memref<1x8x256xf32, #tpu.memory_space<vmem>>, vector<1x8x256xf32>
    %8 = vector.shape_cast %7 : vector<1x8x256xf32> to vector<8x256xf32>
    %9 = vector.extract_strided_slice %8 {offsets = [0, 0], sizes = [8, 128], strides = [1, 1]} : vector<8x256xf32> to vector<8x128xf32>
    %10 = vector.extract_strided_slice %8 {offsets = [0, 128], sizes = [8, 128], strides = [1, 1]} : vector<8x256xf32> to vector<8x128xf32>
    %c0_4 = arith.constant 0 : index
    %c0_5 = arith.constant 0 : index
    %11 = vector.load %arg10[%c0_4, %c0_5] : memref<8x128xf32, #tpu.memory_space<vmem>>, vector<8x128xf32>
    %cst = arith.constant dense<0.000000e+00> : vector<8x8xf32>
    %12 = tpu.matmul %11, %9, %cst {dimension_numbers = #tpu.dot_dimension_numbers<[1], [1], [0], [0], [0, 0, 1, 0], [], []>} : vector<8x128xf32>, vector<8x128xf32>, vector<8x8xf32> -> vector<8x8xf32>
    %c0_6 = arith.constant 0 : index
    %c0_7 = arith.constant 0 : index
    %13 = vector.load %arg11[%c0_6, %c0_7] : memref<8x1xf32, #tpu.memory_space<vmem>>, vector<8x1xf32>
    %cst_8 = arith.constant dense<0xFF800000> : vector<8xf32>
    %14 = vector.multi_reduction <maximumf>, %12, %cst_8 [1] : vector<8x8xf32> to vector<8xf32>
    %15 = vector.shape_cast %14 : vector<8xf32> to vector<8x1xf32>
    %16 = arith.maximumf %13, %15 : vector<8x1xf32>
    %17 = arith.subf %13, %16 : vector<8x1xf32>
    %18 = math.exp %17 : vector<8x1xf32>
    %19 = vector.broadcast %16 : vector<8x1xf32> to vector<8x8xf32>
    %20 = arith.subf %12, %19 : vector<8x8xf32>
    %21 = math.exp %20 : vector<8x8xf32>
    %c0_9 = arith.constant 0 : index
    %c0_10 = arith.constant 0 : index
    %22 = vector.load %arg12[%c0_9, %c0_10] : memref<8x1xf32, #tpu.memory_space<vmem>>, vector<8x1xf32>
    %23 = arith.mulf %18, %22 : vector<8x1xf32>
    %cst_11 = arith.constant dense<0.000000e+00> : vector<8xf32>
    %24 = vector.multi_reduction <add>, %21, %cst_11 [1] : vector<8x8xf32> to vector<8xf32>
    %25 = vector.shape_cast %24 : vector<8xf32> to vector<8x1xf32>
    %26 = arith.addf %23, %25 : vector<8x1xf32>
    %c0_12 = arith.constant 0 : index
    %c0_13 = arith.constant 0 : index
    %27 = vector.load %arg12[%c0_12, %c0_13] : memref<8x1xf32, #tpu.memory_space<vmem>>, vector<8x1xf32>
    tpu.vector_store %arg12[%c0_12, %c0_13], %26 {strides = array<i32>} : memref<8x1xf32, #tpu.memory_space<vmem>>, vector<8x1xf32>,
    %c0_14 = arith.constant 0 : index
    %c0_15 = arith.constant 0 : index
    %28 = vector.load %arg13[%c0_14, %c0_15] : memref<8x128xf32, #tpu.memory_space<vmem>>, vector<8x128xf32>
    %29 = vector.broadcast %18 : vector<8x1xf32> to vector<8x128xf32>
    %30 = arith.mulf %29, %28 : vector<8x128xf32>
    %cst_16 = arith.constant dense<0.000000e+00> : vector<8x128xf32>
    %31 = tpu.matmul %21, %10, %cst_16 {dimension_numbers = #tpu.dot_dimension_numbers<[1], [0], [0], [1], [0, 0, 1, 1], [], []>} : vector<8x8xf32>, vector<8x128xf32>, vector<8x128xf32> -> vector<8x128xf32>
    %32 = arith.addf %30, %31 : vector<8x128xf32>
    %c0_17 = arith.constant 0 : index
    %c0_18 = arith.constant 0 : index
    %33 = vector.load %arg13[%c0_17, %c0_18] : memref<8x128xf32, #tpu.memory_space<vmem>>, vector<8x128xf32>
    tpu.vector_store %arg13[%c0_17, %c0_18], %32 {strides = array<i32>} : memref<8x128xf32, #tpu.memory_space<vmem>>, vector<8x128xf32>,
    %c0_19 = arith.constant 0 : index
    %c0_20 = arith.constant 0 : index
    %34 = vector.load %arg11[%c0_19, %c0_20] : memref<8x1xf32, #tpu.memory_space<vmem>>, vector<8x1xf32>
    tpu.vector_store %arg11[%c0_19, %c0_20], %16 {strides = array<i32>} : memref<8x1xf32, #tpu.memory_space<vmem>>, vector<8x1xf32>,
    %c0_i32_21 = arith.constant 0 : i32
    %35 = arith.cmpi eq, %arg2, %c0_i32_21 : i32
    %36 = arith.extui %35 : i1 to i32
    %c0_i32_22 = arith.constant 0 : i32
    %37 = arith.cmpi ne, %36, %c0_i32_22 : i32
    scf.if %37 {
      %c0_23 = arith.constant 0 : index
      %c0_24 = arith.constant 0 : index
      %38 = vector.load %arg12[%c0_23, %c0_24] : memref<8x1xf32, #tpu.memory_space<vmem>>, vector<8x1xf32>
      %39 = tpu.reciprocal %38 {approx = true} : vector<8x1xf32> -> vector<8x1xf32>
      %40 = arith.mulf %38, %39 : vector<8x1xf32>
      %cst_25 = arith.constant 2.000000e+00 : f32
      %41 = vector.broadcast %cst_25 : f32 to vector<8x1xf32>
      %42 = arith.subf %41, %40 : vector<8x1xf32>
      %43 = arith.mulf %39, %42 : vector<8x1xf32>
      %c0_26 = arith.constant 0 : index
      %c0_27 = arith.constant 0 : index
      %44 = vector.load %arg13[%c0_26, %c0_27] : memref<8x128xf32, #tpu.memory_space<vmem>>, vector<8x128xf32>
      %45 = vector.broadcast %43 : vector<8x1xf32> to vector<8x128xf32>
      %46 = arith.mulf %44, %45 : vector<8x128xf32>
      %c0_28 = arith.constant 0 : index
      %c0_29 = arith.constant 0 : index
      %c0_30 = arith.constant 0 : index
      %47 = vector.load %arg9[%c0_28, %c0_29, %c0_30] : memref<1x8x128xf32, #tpu.memory_space<vmem>>, vector<1x8x128xf32>
      %48 = vector.shape_cast %47 : vector<1x8x128xf32> to vector<8x128xf32>
      %49 = vector.shape_cast %46 : vector<8x128xf32> to vector<1x8x128xf32>
      tpu.vector_store %arg9[%c0_28, %c0_29, %c0_30], %49 {strides = array<i32>} : memref<1x8x128xf32, #tpu.memory_space<vmem>>, vector<1x8x128xf32>,
    } else {
    }
    return
  }
  func.func @transform_0(%arg0: i32, %arg1: i32, %arg2: i32) -> (i32, i32, i32) {
    %c0_i32 = arith.constant 0 : i32
    %c0_i32_0 = arith.constant 0 : i32
    return %arg0, %arg1, %c0_i32 : i32, i32, i32
  }
  func.func @transform_1(%arg0: i32, %arg1: i32, %arg2: i32) -> (i32, i32, i32) {
    %c0_i32 = arith.constant 0 : i32
    %c0_i32_0 = arith.constant 0 : i32
    return %arg0, %arg2, %c0_i32 : i32, i32, i32
  }
  func.func @transform_2(%arg0: i32, %arg1: i32, %arg2: i32) -> (i32, i32) {
    %c0_i32 = arith.constant 0 : i32
    %c0_i32_0 = arith.constant 0 : i32
    %c0_i32_1 = arith.constant 0 : i32
    return %c0_i32, %c0_i32_0 : i32, i32
  }
  func.func @transform_3(%arg0: i32, %arg1: i32, %arg2: i32) -> (i32, i32) {
    %c0_i32 = arith.constant 0 : i32
    %c0_i32_0 = arith.constant 0 : i32
    %c0_i32_1 = arith.constant 0 : i32
    return %c0_i32, %c0_i32_0 : i32, i32
  }
  func.func @transform_4(%arg0: i32, %arg1: i32, %arg2: i32) -> (i32, i32) {
    %c0_i32 = arith.constant 0 : i32
    %c0_i32_0 = arith.constant 0 : i32
    %c0_i32_1 = arith.constant 0 : i32
    return %c0_i32, %c0_i32_0 : i32, i32
  }
  func.func @transform_5(%arg0: i32, %arg1: i32, %arg2: i32) -> (i32, i32) {
    %c0_i32 = arith.constant 0 : i32
    %c0_i32_0 = arith.constant 0 : i32
    %c0_i32_1 = arith.constant 0 : i32
    return %c0_i32, %c0_i32_0 : i32, i32
  }
  func.func @transform_6(%arg0: i32, %arg1: i32, %arg2: i32) -> (i32, i32, i32) {
    %c0_i32 = arith.constant 0 : i32
    %c0_i32_0 = arith.constant 0 : i32
    return %arg0, %arg1, %c0_i32 : i32, i32, i32
  }
}

</mosaic_0001>

<bundles_post_ra>
// kernel: tpu_custom_call.1
= control target key start
LH: loop header
LB: loop body
LE: loop exit
PB: predicated region body
PF: predicated region fallthrough
CT: control target
= control target key end

     0   :  { %s1767_s0 = inlined_call_operand.hbm [shape: f32[2,8,128], index: 0, kind: input, shape index: {}]   ;;  %s1768_s1 = inlined_call_operand.hbm [shape: f32[2,8,128], index: 1, kind: input, shape index: {}]   ;;  %s1769_s2 = inlined_call_operand.hbm [shape: f32[128,128], index: 2, kind: input, shape index: {}]   ;;  %s1770_s3 = inlined_call_operand.vmem [shape: f32[1,128], index: 3, kind: input, shape index: {}]   ;;  %s1771_s4 = inlined_call_operand.hbm [shape: f32[128,256], index: 4, kind: input, shape index: {}]   ;;  %s1772_s5 = inlined_call_operand.vmem [shape: f32[1,256], index: 5, kind: input, shape index: {}]   ;;  %s1773_s6 = inlined_call_operand.hbm [shape: f32[2,8,128], index: 6, kind: output, shape index: {}]  }
   0x1   :  { %1780 = sst [smem:[#allocation24_spill]] %s1769_s2 }
   0x2   :  { %1781 = sst [smem:[#allocation25_spill]] %s1771_s4 }
   0x3   :  { %11 = vsyncpa [#allocation8], 0 }
   0x4   :  { %13 = vsyncpa [#allocation8 + $0x1], 0 }
   0x5   :  { %14 = vsyncpa [#allocation11], 0 }
   0x6   :  { %16 = vsyncpa [#allocation11 + $0x1], 0 }
   0x7   :  { %17 = vsyncpa [#allocation14], 0 }
   0x8   :  { %18 = vsyncpa [#allocation9], 0 }
   0x9   :  { %20 = vsyncpa [#allocation9 + $0x1], 0  ;;  %s1443_s21 = smov 0   ;;  %s1445_s22 = smov 0  }
   0xa   :  { %s1447_s23 = smov 0   ;;  %s1449_s24 = smov 0  }
   0xb   :  { %s1451_s25 = smov 0   ;;  %s1453_s26 = smov 0  }
   0xc LB: > { %1782 = sst [smem:[#allocation21_spill]] %s1388_s25  ;;  %s1474_s27 = sadd.s32 4294967295, %s1392_s26   ;;  %s1392_s26 = sphi %s1453_s26, %s26_s26   ;;  %s1388_s25 = sphi %s1451_s25, %s1805_s25   ;;  %s1384_s24 = sphi %s1449_s24, %s1804_s24   ;;  %s1380_s23 = sphi %s1447_s23, %s1808_s23   ;;  %s1376_s22 = sphi %s1445_s22, %s1807_s22   ;;  %s1372_s21 = sphi %s1443_s21, %s1806_s21  }
   0xd   : > { %s934_s28 = sadd.s32 4294967294, %s1392_s26   ;;  %p67_p0 = scmp.ne.s32.totalorder %s1376_s22, %s1372_s21 }
   0xe   : > { %p1774_p1 = scmp.eq.s32.totalorder %s1474_s27, 0  ;;  %p211_p3 = scmp.eq.s32.totalorder %s934_s28, 1 }
   0xf   : > { %p935_p5 = scmp.ge.s32.totalorder %s1392_s26, 1  ;;  %p218_p7 = scmp.lt.s32.totalorder %s1392_s26, 3 }
  0x10   : > { %p1483_p4 = por %p1774_p1, %p67_p0  ;;  %p1488_p6 = por %p211_p3, %p67_p0 }
  0x11   : > { %p1493_p8 = pnand %p935_p5, %p218_p7  ;;  %s1394_s8 = smov [#allocation12]  }
  0x12   : > { %s1783_s29 = scalar_select %p1483_p4, 1, 0 }
  0x13   : > { %s1784_s30 = scalar_select %p1488_p6, 1, 0 }
  0x14   : > { %s1785_s7 = scalar_select %p1493_p8, 1, 0 }
  0x15   : > { %s230_s9 = sshll.u32 %s1394_s8, 4  ;;  %p1091_p9 = pneg %p1493_p8  ;;  %s1497_s9 = int_to_ptr.vmem [resolvable:$true] %s230_s9 }
  0x16   : > { %s1395_s11 = smov [#allocation13]   ;;  %s1787_s2 = sld [smem:[#allocation24_spill]] }
  0x17   : > { %p1504_p11 = pnand %p1091_p9, %p1774_p1  ;;  %s246_s12 = sshll.u32 %s1395_s11, 4  ;;  %s1508_s12 = int_to_ptr.vmem [resolvable:$true] %s246_s12 }
  0x19   : > { %p1184_p13 = pneg %p1504_p11 }
  0x1c   : > { %s1182_s15 = scalar_lea.hbm %s1787_s2, 2048 }
  0x1d   : > { %p1183_p12 = scmp.ne.s32.totalorder %s1787_s2, %s1182_s15  ;;  %p1189_p5 = scmp.lt.u32.totalorder %s1182_s15, %s1787_s2 }
  0x1f   : > { %p1185_p0 = pnand %p1184_p13, %p1183_p12 }
  0x21   : > { %p1186_p3 = pneg %p1185_p0 }
  0x23   : > { %p1191_p7 = pnand %p1189_p5, %p1186_p3 }
  0x25   : > { %1194 = shalt.err (!%p1191_p7)
}
  0x26   : > { %s1195_s20 = scalar_lea.vmem %s1497_s9, 2048  ;;  %p1203_p2 = scmp.lt.s32.totalorder %s1497_s9, %s1497_s9 }
  0x27   : > { %p1196_p9 = scmp.ne.s32.totalorder %s1497_s9, %s1195_s20  ;;  %p1204_p12 = scmp.lt.s32.totalorder %s1195_s20, %s1195_s20 }
  0x29   : > { %p1198_p10 = pnand %p1196_p9, %p1184_p13  ;;  %p1205_p0 = por %p1204_p12, %p1203_p2 }
  0x2b   : > { %p1199_p1 = pneg %p1198_p10 }
  0x2d   : > { %p1206_p6 = pnand %p1205_p0, %p1199_p1 }
  0x2f   : > { %1209 = shalt.err (!%p1206_p6)
}
  0x30   : > { %s1396_s28 = smov 128   ;;  %s1397_s8 = smov 8  }
  0x31   : > { %1094 = dma.hbm_to_vmem [thread:$0]  (!%p1504_p11), %s1787_s2, 2048, %s1497_s9, [#allocation11], %s1396_s28, %s1396_s28, %s1397_s8  }
  0x32   : > { %s1788_s4 = sld [smem:[#allocation25_spill]] }
  0x38   : > { %s1210_s16 = scalar_lea.hbm %s1788_s4, 4096 }
  0x39   : > { %p1211_p2 = scmp.ne.s32.totalorder %s1788_s4, %s1210_s16  ;;  %p1217_p10 = scmp.lt.u32.totalorder %s1210_s16, %s1788_s4 }
  0x3b   : > { %p1213_p1 = pnand %p1211_p2, %p1184_p13 }
  0x3d   : > { %p1214_p6 = pneg %p1213_p1 }
  0x3f   : > { %p1219_p3 = pnand %p1217_p10, %p1214_p6 }
  0x41   : > { %1222 = shalt.err (!%p1219_p3)
}
  0x42   : > { %s1223_s9 = scalar_lea.vmem %s1508_s12, 4096  ;;  %p1231_p12 = scmp.lt.s32.totalorder %s1508_s12, %s1508_s12 }
  0x43   : > { %p1224_p5 = scmp.ne.s32.totalorder %s1508_s12, %s1223_s9  ;;  %p1232_p0 = scmp.lt.s32.totalorder %s1223_s9, %s1223_s9 }
  0x45   : > { %p1226_p7 = pnand %p1224_p5, %p1184_p13  ;;  %p1233_p2 = por %p1232_p0, %p1231_p12 }
  0x47   : > { %p1227_p9 = pneg %p1226_p7 }
  0x49   : > { %p1234_p1 = pnand %p1233_p2, %p1227_p9 }
  0x4b   : > { %1237 = shalt.err (!%p1234_p1)
}
  0x4c   : > { %s1398_s28 = smov 256   ;;  %s1399_s8 = smov 16  }
  0x4d   : > { %1097 = dma.hbm_to_vmem [thread:$0]  (!%p1504_p11), %s1788_s4, 4096, %s1508_s12, [#allocation14], %s1398_s28, %s1398_s28, %s1399_s8  }
  0x4e   : > { %s45_s14 = sadd.s32 1, %s1388_s25  ;;  %s54_s15 = sadd.s32 1, %s1380_s23 }
  0x4f   : > { %p47_p13 = scmp.ge.s32.totalorder %s45_s14, 2  ;;  %p61_p6 = scmp.ne.s32.totalorder %s1380_s23, %s1376_s22 }
  0x50   : > { %p62_p10 = scmp.eq.s32.totalorder %s1392_s26, 0  ;;  %p1111_p3 = scmp.lt.s32.totalorder %s1392_s26, 2 }
  0x51   : > { %s1810_s14 = smov (%p47_p13, %s45_s14), 0  ;;  %p1790_p7 = scmp.eq.s32.totalorder %s1474_s27, 1 }
  0x52   : > { %1789 = sst [smem:[#allocation22_spill]] %s1810_s14  ;;  %p63_p5 = por %p62_p10, %p61_p6 }
  0x53   : > { %p1572_p9 = por %p1790_p7, %p61_p6  ;;  %s49_s10 = ssub.s32 %s1388_s25, %s1810_s14 }
  0x54   : > { %s263_s17 = sand.u32 1, %s1380_s23   ;;  %p52_p12 = scmp.eq.s32.totalorder %s49_s10, 0 }
  0x55   : > { %s1791_s16 = scalar_select %p1572_p9, 1, 0 }
  0x56   : > { %s1579_s12 = sshll.u32 %s263_s17, 3  ;;  %s940_s18 = sshll.u32 %s1388_s25, 7 }
  0x57   : > { %s1583_s19 = scalar_select %p52_p12, %s1380_s23, %s54_s15  }
  0x58   : > { %s1588_s28 = scalar_lea.hbm %s1767_s0, %s940_s18  ;;  %s267_s8 = scalar_lea.vmem [#allocation7], %s1579_s12 }
  0x59   : > { %1792 = sst [smem:[#allocation23_spill]] %s1583_s19  ;;  %s275_s11 = sshll.u32 %s267_s8, 4  ;;  %s1597_s11 = int_to_ptr.vmem [resolvable:$true] %s275_s11 }
  0x5a   : > { %p1593_p11 = pnand %p1111_p3, %p63_p5  ;;  %s1602_s20 = scalar_lea.hbm %s1768_s1, %s940_s18 }
  0x5b   : > { %s264_s9 = scalar_lea.sflag [#allocation8], %s263_s17  ;;  %s1238_s2 = scalar_lea.hbm %s1588_s28, 128 }
  0x5c   : > { %p1239_p0 = scmp.ne.s32.totalorder %s1588_s28, %s1238_s2  ;;  %p1240_p2 = pneg %p1593_p11 }
  0x5d   : > { %s1243_s14 = scalar_lea.hbm %s1767_s0, 256  ;;  %p1244_p6 = scmp.lt.u32.totalorder %s1588_s28, %s1767_s0 }
  0x5e   : > { %p1241_p1 = pnand %p1240_p2, %p1239_p0  ;;  %p1245_p10 = scmp.lt.u32.totalorder %s1243_s14, %s1238_s2 }
  0x5f   : > { %p1247_p5 = scmp.lt.u32.totalorder %s1238_s2, %s1588_s28 }
  0x60   : > { %p1242_p13 = pneg %p1241_p1  ;;  %p1246_p3 = por %p1245_p10, %p1244_p6 }
  0x62   : > { %p1248_p7 = por %p1247_p5, %p1246_p3 }
  0x64   : > { %p1249_p12 = pnand %p1248_p7, %p1242_p13 }
  0x66   : > { %1252 = shalt.err (!%p1249_p12)
}
  0x67   : > { %s1253_s17 = scalar_lea.vmem %s1597_s11, 128  ;;  %s1400_s4 = smov [#allocation7]  }
  0x68   : > { %p1254_p0 = scmp.ne.s32.totalorder %s1597_s11, %s1253_s17  ;;  %s1258_s18 = sshll.u32 %s1400_s4, 4  ;;  %s1259_s18 = int_to_ptr.vmem [resolvable:$false] %s1258_s18 }
  0x69   : > { %s1260_s25 = scalar_lea.vmem %s1259_s18, 256  ;;  %p1261_p4 = scmp.lt.s32.totalorder %s1597_s11, %s1259_s18 }
  0x6a   : > { %p1256_p1 = pnand %p1254_p0, %p1240_p2  ;;  %p1262_p6 = scmp.lt.s32.totalorder %s1260_s25, %s1253_s17 }
  0x6c   : > { %p1257_p9 = pneg %p1256_p1  ;;  %p1263_p10 = por %p1262_p6, %p1261_p4 }
  0x6e   : > { %p1264_p3 = pnand %p1263_p10, %p1257_p9 }
  0x70   : > { %1267 = shalt.err (!%p1264_p3)
}
  0x71   : > { %1101 = dma.hbm_to_vmem [thread:$0]  (!%p1593_p11), %s1588_s28, 128, %s1597_s11, %s264_s9  }
  0x72   : > { %s282_s2 = sand.u32 1, %s1392_s26   ;;  %s286_s14 = scalar_lea.vmem [#allocation10], %s1579_s12 }
  0x73   : > { %s294_s19 = sshll.u32 %s286_s14, 4  ;;  %s283_s15 = scalar_lea.sflag [#allocation11], %s282_s2  ;;  %s295_s19 = int_to_ptr.vmem [resolvable:$true] %s294_s19 }
  0x74   : > { %s1268_s10 = scalar_lea.hbm %s1602_s20, 128  ;;  %s1273_s4 = scalar_lea.hbm %s1768_s1, 256 }
  0x75   : > { %p1269_p4 = scmp.ne.s32.totalorder %s1602_s20, %s1268_s10  ;;  %p1274_p5 = scmp.lt.u32.totalorder %s1602_s20, %s1768_s1 }
  0x76   : > { %p1275_p7 = scmp.lt.u32.totalorder %s1273_s4, %s1268_s10  ;;  %p1277_p0 = scmp.lt.u32.totalorder %s1268_s10, %s1602_s20 }
  0x77   : > { %p1271_p9 = pnand %p1269_p4, %p1240_p2 }
  0x78   : > { %p1276_p12 = por %p1275_p7, %p1274_p5 }
  0x79   : > { %p1272_p13 = pneg %p1271_p9 }
  0x7a   : > { %p1278_p1 = por %p1277_p0, %p1276_p12 }
  0x7c   : > { %p1279_p6 = pnand %p1278_p1, %p1272_p13 }
  0x7e   : > { %1282 = shalt.err (!%p1279_p6)
}
  0x7f   : > { %s1283_s12 = scalar_lea.vmem %s295_s19, 128  ;;  %s1401_s28 = smov [#allocation10]  }
  0x80   : > { %p1284_p10 = scmp.ne.s32.totalorder %s295_s19, %s1283_s12  ;;  %s1288_s11 = sshll.u32 %s1401_s28, 4  ;;  %s1289_s11 = int_to_ptr.vmem [resolvable:$false] %s1288_s11 }
  0x81   : > { %s1290_s9 = scalar_lea.vmem %s1289_s11, 256  ;;  %p1291_p9 = scmp.lt.s32.totalorder %s295_s19, %s1289_s11 }
  0x82   : > { %p1286_p3 = pnand %p1284_p10, %p1240_p2  ;;  %p1292_p8 = scmp.lt.s32.totalorder %s1290_s9, %s1283_s12 }
  0x84   : > { %p1287_p4 = pneg %p1286_p3  ;;  %p1293_p5 = por %p1292_p8, %p1291_p9 }
  0x86   : > { %p1294_p7 = pnand %p1293_p5, %p1287_p4 }
  0x88   : > { %1297 = shalt.err (!%p1294_p7)
}
  0x89   : > { %1104 = dma.hbm_to_vmem [thread:$0]  (!%p1593_p11), %s1602_s20, 128, %s295_s19, %s283_s15  }
  0x8a   : > { %p1794_p13 = scmp.ne.s32.totalorder %s1785_s7, 0 }
  0x8b   : > { %s1653_s2 = sand.u32 (!%p1794_p13), 1, %s1376_s22   ;;  %p1795_p8 = scmp.ne.s32.totalorder (!%p1794_p13), %s1783_s29, 0 }
  0x8c   : > { %303 = sbr.rel (%p1794_p13) target bundleno = 1225 (0x4c9), region = 44  ;;  %s1656_s14 = sshll.u32 (!%p1794_p13), %s1653_s2, 3 }
  0x8d   : > { %s306_s10 = scalar_lea.sflag (!%p1794_p13), [#allocation8], %s1653_s2  ;;  %s309_s8 = scalar_lea.vmem (!%p1794_p13), [#allocation7], %s1656_s14 }
  0x93   : > { %1351 = dma.done.wait (%p1795_p8), %s306_s10, 128  }
  0x94   : > { %1353 = vsyncadd (%p1795_p8), %s306_s10, 4294967168  ;;  %s314_s7 = sand.u32 1, %s1474_s27   ;;  %s318_s20 = scalar_lea.vmem [#allocation10], %s1656_s14 }
  0x95   : > { %s315_s13 = scalar_lea.sflag [#allocation11], %s314_s7 }
  0x96   : > { %1355 = dma.done.wait (%p1795_p8), %s315_s13, 128  }
  0x97   : > { %1357 = vsyncadd (%p1795_p8), %s315_s13, 4294967168  ;;  %p1796_p11 = scmp.eq.s32.totalorder %s1474_s27, 0 }
  0x99   : > { %1359 = dma.done.wait (%p1796_p11), [#allocation11], 2048   ;;  %p1797_p2 = pmov %p1796_p11 }
  0x9b   : > { %1361 = vsyncadd (%p1797_p2), [#allocation11], 4294965248  ;;  %p1798_p12 = pmov %p1797_p2 }
  0x9c   : > { %p1799_p0 = pmov %p1797_p2 }
  0x9d   : > { %1363 = dma.done.wait (%p1798_p12), [#allocation14], 4096  }
  0x9e   : > { %1365 = vsyncadd (%p1799_p0), [#allocation14], 4294963200  ;;  %v1402_v0 = vmov 0.0|0.0   ;;  %v1403_v1 = vmov 0.0   ;;  %vm1404_vm0 = vmmov 0   ;;  %v469_v2 = vld [vmem:[#allocation13 + $0x8] sm:$0xff] }
  0x9f   : > { %1021 = vmatprep.subr.bf16.mxu0 %v1402_v0  ;;  %576 = vmatprep.mubr.f32.mxu1 %v1403_v1  ;;  %v471_v3 = vld [vmem:[#allocation13 + $0x18] sm:$0xff]  ;;  %v468_v4 = vld [vmem:[#allocation13] sm:$0xff]  ;;  %v470_v6 = vld [vmem:[#allocation13 + $0x10] sm:$0xff]  ;;  %vm459_vm1 = vcmask 7168   ;;  %vm665_vm2 = vcmask 64512   ;;  %s952_s17 = sshll.u32 %s1384_s24, 7 }
  0xa0   : > { %1008 = vmatprep.mubr.msk.f32.mxu0 %vm1404_vm0, %v1403_v1  ;;  %v1045_v5 = vpack.c.bf16 %v471_v3, %v469_v2  ;;  %v365_v7 = vld [vmem:[#allocation12] sm:$0xff]  ;;  %v366_v8 = vld [vmem:[#allocation12 + $0x8] sm:$0xff]  ;;  %v1047_v9 = vpack.c.bf16 %v470_v6, %v468_v4  ;;  %v475_v12 = vld [vmem:[#allocation13 + $0x38] sm:$0xff]  ;;  %461 = vst.msk [vmem:[#allocation4] sm:$0xff] %vm459_vm1, %v1403_v1  ;;  %s359_s4 = scalar_lea.vmem [#allocation15], %s1656_s14  ;;  %s1718_s28 = scalar_lea.hbm %s1773_s6, %s952_s17 }
  0xa1   : > { %v1022_v10 = vpack.c.bf16 %v366_v8, %v365_v7  ;;  %v473_v11 = vld [vmem:[#allocation13 + $0x28] sm:$0xff]  ;;  %v472_v13 = vld [vmem:[#allocation13 + $0x20] sm:$0xff]  ;;  %v474_v15 = vld [vmem:[#allocation13 + $0x30] sm:$0xff]  ;;  %s803_s18 = sshll.u32 %s359_s4, 4  ;;  %s789_s11 = scalar_lea.sflag [#allocation9], %s1653_s2  ;;  %s1720_s18 = int_to_ptr.vmem [resolvable:$true] %s803_s18 }
  0xa2   : > { %1046 = vmatprep.subr.bf16.mxu1 %v1045_v5  ;;  %v1049_v14 = vpack.c.bf16 %v475_v12, %v473_v11  ;;  %v367_v16 = vld [vmem:[#allocation12 + $0x10] sm:$0xff]  ;;  %v368_v17 = vld [vmem:[#allocation12 + $0x18] sm:$0xff]  ;;  %v1051_v18 = vpack.c.bf16 %v474_v15, %v472_v13  ;;  %v477_v20 = vld [vmem:[#allocation13 + $0x48] sm:$0xff]  ;;  %s1298_s9 = scalar_lea.vmem %s1720_s18, 128  ;;  %p1800_p6 = scmp.ne.s32.totalorder %s1791_s16, 0 }
  0xa3   : > { %1048 = vmatpush1.bf16.msra.mxu1 %v1047_v9  ;;  %1023 = vmatpush3.bf16.msra.mxu0 %v1022_v10  ;;  %v1025_v19 = vpack.c.bf16 %v368_v17, %v367_v16  ;;  %v479_v21 = vld [vmem:[#allocation13 + $0x58] sm:$0xff]  ;;  %v476_v22 = vld [vmem:[#allocation13 + $0x40] sm:$0xff]  ;;  %v478_v24 = vld [vmem:[#allocation13 + $0x50] sm:$0xff]  ;;  %p1299_p1 = scmp.ne.s32.totalorder %s1720_s18, %s1298_s9  ;;  %s1407_s24 = smov [#allocation15]  }
  0xa4   : > { %1050 = vmatprep.subr.bf16.mxu1 %v1049_v14  ;;  %1024 = vmatprep.subr.bf16.mxu0 %v1402_v0  ;;  %v1053_v23 = vpack.c.bf16 %v479_v21, %v477_v20  ;;  %v369_v25 = vld [vmem:[#allocation12 + $0x20] sm:$0xff]  ;;  %v370_v26 = vld [vmem:[#allocation12 + $0x28] sm:$0xff]  ;;  %v483_v28 = vld [vmem:[#allocation13 + $0x78] sm:$0xff]  ;;  %v1055_v29 = vpack.c.bf16 %v478_v24, %v476_v22  ;;  %v502_v14 = vlaneseq  ;;  %s1302_s14 = sshll.u32 %s1407_s24, 4  ;;  %s1303_s14 = int_to_ptr.vmem [resolvable:$false] %s1302_s14 }
  0xa5   : > { %v481_v27 = vld [vmem:[#allocation13 + $0x68] sm:$0xff]  ;;  %v1028_v30 = vpack.c.bf16 %v370_v26, %v369_v25  ;;  %v480_v31 = vld [vmem:[#allocation13 + $0x60] sm:$0xff]  ;;  %v482_v33 = vld [vmem:[#allocation13 + $0x70] sm:$0xff]  ;;  %p1300_p10 = pnand %p1299_p1, %p1800_p6  ;;  %s1304_s10 = scalar_lea.vmem %s1303_s14, 256 }
  0xa6   : > { %v1057_v32 = vpack.c.bf16 %v483_v28, %v481_v27  ;;  %v371_v34 = vld [vmem:[#allocation12 + $0x30] sm:$0xff]  ;;  %v372_v35 = vld [vmem:[#allocation12 + $0x38] sm:$0xff]  ;;  %v485_v36 = vld [vmem:[#allocation13 + $0x88] sm:$0xff]  ;;  %v1059_v38 = vpack.c.bf16 %v482_v33, %v480_v31  ;;  %v1405_v28 = vmov -inf   ;;  %p1305_p4 = scmp.lt.s32.totalorder %s1720_s18, %s1303_s14  ;;  %p1306_p9 = scmp.lt.s32.totalorder %s1304_s10, %s1298_s9 }
  0xa7   : > { %1052 = vmatpush1.bf16.msra.mxu1 %v1051_v18  ;;  %1026 = vmatpush3.bf16.msra.mxu0 %v1025_v19  ;;  %v487_v37 = vld [vmem:[#allocation13 + $0x98] sm:$0xff]  ;;  %v1031_v39 = vpack.c.bf16 %v372_v35, %v371_v34  ;;  %v484_v40 = vld [vmem:[#allocation13 + $0x80] sm:$0xff]  ;;  %v486_v42 = vld [vmem:[#allocation13 + $0x90] sm:$0xff]  ;;  %460 = vst.msk [vmem:[#allocation3] sm:$0xff] %vm459_vm1, %v1405_v28  ;;  %p1301_p3 = pneg %p1300_p10 }
  0xa8   : > { %1054 = vmatprep.subr.bf16.mxu1 %v1053_v23  ;;  %1027 = vmatprep.subr.bf16.mxu0 %v1402_v0  ;;  %v1061_v41 = vpack.c.bf16 %v487_v37, %v485_v36  ;;  %v373_v43 = vld [vmem:[#allocation12 + $0x40] sm:$0xff]  ;;  %v374_v44 = vld [vmem:[#allocation12 + $0x48] sm:$0xff]  ;;  %v491_v46 = vld [vmem:[#allocation13 + $0xb8] sm:$0xff]  ;;  %v1063_v47 = vpack.c.bf16 %v486_v42, %v484_v40  ;;  %p1307_p5 = por %p1306_p9, %p1305_p4 }
  0xa9   : > { %v489_v45 = vld [vmem:[#allocation13 + $0xa8] sm:$0xff]  ;;  %v1034_v48 = vpack.c.bf16 %v374_v44, %v373_v43  ;;  %v488_v49 = vld [vmem:[#allocation13 + $0xa0] sm:$0xff]  ;;  %v490_v51 = vld [vmem:[#allocation13 + $0xb0] sm:$0xff] }
  0xaa   : > { %v1065_v50 = vpack.c.bf16 %v491_v46, %v489_v45  ;;  %v375_v52 = vld [vmem:[#allocation12 + $0x50] sm:$0xff]  ;;  %v376_v53 = vld [vmem:[#allocation12 + $0x58] sm:$0xff]  ;;  %v493_v54 = vld [vmem:[#allocation13 + $0xc8] sm:$0xff]  ;;  %v1067_v56 = vpack.c.bf16 %v490_v51, %v488_v49  ;;  %p1308_p7 = pnand %p1307_p5, %p1301_p3 }
  0xab   : > { %1056 = vmatpush1.bf16.msra.mxu1 %v1055_v29  ;;  %1029 = vmatpush3.bf16.msra.mxu0 %v1028_v30  ;;  %v495_v55 = vld [vmem:[#allocation13 + $0xd8] sm:$0xff]  ;;  %v1037_v57 = vpack.c.bf16 %v376_v53, %v375_v52  ;;  %v492_v58 = vld [vmem:[#allocation13 + $0xc0] sm:$0xff]  ;;  %v494_v60 = vld [vmem:[#allocation13 + $0xd0] sm:$0xff] }
  0xac   : > { %1058 = vmatprep.subr.bf16.mxu1 %v1057_v32  ;;  %1030 = vmatprep.subr.bf16.mxu0 %v1402_v0  ;;  %v1069_v59 = vpack.c.bf16 %v495_v55, %v493_v54  ;;  %v377_v61 = vld [vmem:[#allocation12 + $0x60] sm:$0xff]  ;;  %v378_v62 = vld [vmem:[#allocation12 + $0x68] sm:$0xff]  ;;  %v499_v2 = vld [vmem:[#allocation13 + $0xf8] sm:$0xff]  ;;  %v1071_v3 = vpack.c.bf16 %v494_v60, %v492_v58  ;;  %v1406_v32 = vmov 0  }
  0xad   : > { %v497_v63 = vld [vmem:[#allocation13 + $0xe8] sm:$0xff]  ;;  %v1040_v4 = vpack.c.bf16 %v378_v62, %v377_v61  ;;  %v496_v5 = vld [vmem:[#allocation13 + $0xe0] sm:$0xff]  ;;  %v498_v7 = vld [vmem:[#allocation13 + $0xf0] sm:$0xff]  ;;  %1174 = vset.pattern.permute.xlu0 %v1406_v32  ;;  %1175 = vset.pattern.permute.xlu1 %v1406_v32 }
  0xae   : > { %v1073_v6 = vpack.c.bf16 %v499_v2, %v497_v63  ;;  %v379_v8 = vld [vmem:[#allocation12 + $0x70] sm:$0xff]  ;;  %v380_v9 = vld [vmem:[#allocation12 + $0x78] sm:$0xff]  ;;  %v1075_v10 = vpack.c.bf16 %v498_v7, %v496_v5  ;;  %v364_v13 = vld [vmem:[%s309_s8] sm:$0xff] }
  0xaf   : > { %1060 = vmatpush1.bf16.msra.mxu1 %v1059_v38  ;;  %1032 = vmatpush3.bf16.msra.mxu0 %v1031_v39  ;;  %v1043_v11 = vpack.c.bf16 %v380_v9, %v379_v8  ;;  %v467_v12 = vld [vmem:[%s318_s20] sm:$0xff] }
  0xb0   : > { %1062 = vmatprep.subr.bf16.mxu1 %v1061_v41  ;;  %1033 = vmatprep.subr.bf16.mxu0 %v1402_v0  ;;  %v500_v16 = vld [vmem:[%s1772_s5] sm:$0x3]  ;;  %v681_v43 = vld [vmem:[#allocation4] sm:$0xff] }
  0xb1   : > { %v949_v20 = vld [vmem:[%s1770_s3] ss:$0 sm:$0xff] }
  0xb2   : > { %v664_v33 = vld [vmem:[#allocation3] sm:$0xff] }
  0xb3   : > { %1064 = vmatpush1.bf16.msra.mxu1 %v1063_v47  ;;  %1035 = vmatpush3.bf16.msra.mxu0 %v1034_v48 }
  0xb4   : > { %1066 = vmatprep.subr.bf16.mxu1 %v1065_v50  ;;  %1036 = vmatprep.subr.bf16.mxu0 %v1402_v0 }
  0xb7   : > { %1068 = vmatpush1.bf16.msra.mxu1 %v1067_v56  ;;  %1038 = vmatpush3.bf16.msra.mxu0 %v1037_v57 }
  0xb8   : > { %1070 = vmatprep.subr.bf16.mxu1 %v1069_v59  ;;  %1039 = vmatprep.subr.bf16.mxu0 %v1402_v0 }
  0xbb   : > { %1072 = vmatpush1.bf16.msra.mxu1 %v1071_v3  ;;  %1041 = vmatpush3.bf16.msra.mxu0 %v1040_v4 }
  0xbc   : > { %1074 = vmatprep.subr.bf16.mxu1 %v1073_v6  ;;  %1042 = vmatprep.subr.bf16.mxu0 %v1402_v0  ;;  %v503_v0 = vshrl.u32 %v502_v14, 7 }
  0xbe   : > { %v504_v15 = vsub.s32 0, %v503_v0  ;;  %v508_v17 = vsub.s32 1, %v503_v0 }
  0xbf   : > { %1076 = vmatpush1.bf16.msra.mxu1 %v1075_v10  ;;  %1044 = vmatpush3.bf16.msra.mxu0 %v1043_v11 }
  0xc0   : > { %1011 = vmatprep.subr.mxu0 %v1403_v1  ;;  %1016 = vmatprep.subr.mxu1 %v1403_v1  ;;  %v505_v18 = vrot.slane %v500_v16, %v504_v15  ;;  %v509_v19 = vrot.slane %v500_v16, %v508_v17 }
  0xc2   : > { %577 = vmatmul.mubr.f32.vlgmr.msra.gmra.mrb[0].mxu1 %v467_v12  ;;  %1009 = vmatmul.mubr.f32.vlgmr.msra.gmra.mrb[0].mxu0 %v364_v13 }
  0xc3   : > { %1013 = vmatprep.mubr.msk.f32.mxu0 %vm1404_vm0, %v1403_v1  ;;  %1018 = vmatprep.mubr.msk.f32.mxu1 %vm1404_vm0, %v1403_v1 }
 0x195   : > { %v578_v21 = vpop.f32.mrb[0].mxu1  ;;  %v454_v22 = vpop.f32.mrb[0].mxu0 }
 0x196   : > { %v579_v23 = vadd.f32 %v578_v21, %v505_v18  ;;  %v580_v24 = vpop.f32.mrb[1].mxu1  ;;  %v1010_v25 = vpop.f32.mrb[1].mxu0  ;;  %v455_v27 = vadd.f32 %v949_v20, %v454_v22 }
 0x197   : > { %v581_v26 = vadd.f32 %v580_v24, %v509_v19 }
 0x198   : > { %1012 = vmatpush3.xpose.msra.mxu0 %v579_v23 }
 0x199   : > { %1017 = vmatpush3.msra.mxu1 %v581_v26 }
 0x19b   : > { %1014 = vmatmul.mubr.f32.vlgmr.msra.gmra.mrb[2].mxu0 %v455_v27 }
 0x26e   : > { %v660_v29 = vpop.f32.mrb[2].mxu0 }
 0x26f   : > { %v1015_v30 = vpop.f32.mrb[3].mxu0  ;;  %v666_v31 = vsel %vm665_vm2, %v660_v29, -inf }
 0x270   : > { %667 = vmax.xlane.f32.xlu0 %v666_v31 }
 0x2fd   : > { %v668_v34 = vpop.xlane.xlu0 %667 }
 0x2fe   : > { %v669_v35 = vmax.f32 %v664_v33, %v668_v34 }
 0x300   : > { %v670_v36 = vsub.f32 %v664_v33, %v669_v35  ;;  %771 = vst.msk [vmem:[#allocation3] sm:$0xff] %vm459_vm1, %v669_v35  ;;  %675 = vperm.xlu0 %1174, %v669_v35  }
 0x302   : > { %v671_v41 = vmul.f32 1.442695, %v670_v36 }
 0x37f   : > { %v676_v37 = vpop.permute.xlu0 %675 }
 0x380   : > { %v678_v38 = vsub.f32 %v660_v29, %v676_v37 }
 0x382   : > { %v679_v39 = vmul.f32 1.442695, %v678_v38 }
 0x384   : > { %1176 = vpow2.f32 %v679_v39 }
 0x385   : > { %1178 = vpow2.f32 %v671_v41 }
 0x38e   : > { %v1177_v1 = vpop.eup %1176 }
 0x38f   : > { %1019 = vmatmul.mubr.msk.f32.vlgmr.msra.gmra.mrb[2].mxu1 %vm665_vm2, %v1177_v1  ;;  %v683_v40 = vsel %vm665_vm2, %v1177_v1, 0.0  ;;  %v1179_v42 = vpop.eup %1178 }
 0x390   : > { %684 = vadd.xlane.f32.xlu1 %v683_v40  ;;  %v682_v44 = vmul.f32 %v1179_v42, %v681_v43 }
 0x3a1   : > { %692 = vperm.xlu1 %1175, %v1179_v42  }
 0x41d   : > { %v685_v45 = vpop.xlane.xlu1 %684 }
 0x41e   : > { %v686_v46 = vadd.f32 %v685_v45, %v682_v44 }
 0x420   : > { %688 = vst.msk [vmem:[#allocation4] sm:$0xff] %vm459_vm1, %v686_v46 }
 0x421   : > { %v693_v54 = vpop.permute.xlu1 %692 }
 0x422   : > { %v695_v55 = vmul.f32 0.0, %v693_v54 }
 0x427   : > { %v775_v47 = vld [vmem:[#allocation4] sm:$0xff] }
 0x428   : > { %1180 = vrcp.f32 %v775_v47 }
 0x432   : > { %v1181_v48 = vpop.eup %1180 }
 0x433   : > { %v777_v49 = vmul.f32 %v1181_v48, %v775_v47 }
 0x435   : > { %v778_v50 = vsub.f32 2.0, %v777_v49 }
 0x437   : > { %v779_v51 = vmul.f32 %v1181_v48, %v778_v50 }
 0x439   : > { %783 = vperm.xlu1 %1175, %v779_v51  }
 0x462   : > { %v765_v52 = vpop.f32.mrb[2].mxu1 }
 0x463   : > { %v1020_v53 = vpop.f32.mrb[3].mxu1  ;;  %v769_v56 = vadd.f32 %v765_v52, %v695_v55 }
 0x4b8   : > { %v784_v57 = vpop.permute.xlu1 %783 }
 0x4b9   : > { %v786_v58 = vmul.f32 %v784_v57, %v769_v56 }
 0x4bb   : > { %787 = vst [vmem:[%s359_s4] sm:$0xff] %v786_v58 }
 0x4bc   : > { %1311 = shalt.err (!%p1308_p7)
}
 0x4bd   : > { %s1312_s2 = scalar_lea.hbm %s1718_s28, 128  ;;  %s1316_s13 = scalar_lea.hbm %s1773_s6, 256 }
 0x4be   : > { %p1313_p13 = scmp.ne.s32.totalorder %s1718_s28, %s1312_s2  ;;  %p1317_p2 = scmp.lt.u32.totalorder %s1718_s28, %s1773_s6 }
 0x4bf   : > { %p1318_p12 = scmp.lt.u32.totalorder %s1316_s13, %s1312_s2  ;;  %p1320_p1 = scmp.lt.u32.totalorder %s1312_s2, %s1718_s28 }
 0x4c0   : > { %p1314_p8 = pnand %p1313_p13, %p1800_p6 }
 0x4c1   : > { %p1319_p0 = por %p1318_p12, %p1317_p2 }
 0x4c2   : > { %p1315_p11 = pneg %p1314_p8 }
 0x4c3   : > { %p1321_p10 = por %p1320_p1, %p1319_p0 }
 0x4c5   : > { %p1322_p3 = pnand %p1321_p10, %p1315_p11 }
 0x4c7   : > { %1325 = shalt.err (!%p1322_p3)
}
 0x4c8   : > { %1089 = dma.vmem_to_hbm [thread:$0]  (%p1800_p6), %s1720_s18, 128, %s1718_s28, %s789_s11  }
 0x4c9 PF: > { %s815_s29 = sand.u32 1, %s1372_s21   ;;  %p1801_p4 = scmp.ne.s32.totalorder %s1784_s30, 0 }
 0x4ca   : > { %p1802_p9 = scmp.ge.s32.totalorder %s1392_s26, 2  ;;  %s816_s19 = scalar_lea.sflag [#allocation9], %s815_s29 }
 0x4cc   : > { %p1106_p5 = pnand %p1802_p9, %p1801_p4 }
 0x4ce   : > { %1367 = dma.done.wait (!%p1106_p5), %s816_s19, 128  }
 0x4cf   : > { %1369 = vsyncadd (!%p1106_p5), %s816_s19, 4294967168  ;;  %s26_s26 = sadd.s32 1, %s1392_s26   ;;  %s1803_s16 = sld [smem:[#allocation23_spill]] }
 0x4d0   : > { %p23_p7 = scmp.ge.s32.totalorder %s26_s26, 4   ;;  %s1804_s24 = sld [smem:[#allocation21_spill]] }
 0x4d1   : > { %s1805_s25 = sld [smem:[#allocation22_spill]]  ;;  %s1806_s21 = smov %s1376_s22 }
 0x4d2   : > { %s1807_s22 = smov %s1380_s23  ;;  %25 = sbr.rel (!%p23_p7) target bundleno = 12 (0xc), region = 124 }
 0x4d5   : > { %s1808_s23 = smov %s1803_s16 }
 0x4d9   :  { %821 = vsyncpa [#allocation8], 1 }
 0x4da   :  { %823 = vsyncpa [#allocation8 + $0x1], 1 }
 0x4db   :  { %824 = vsyncpa [#allocation11], 1 }
 0x4dc   :  { %826 = vsyncpa [#allocation11 + $0x1], 1 }
 0x4dd   :  { %827 = vsyncpa [#allocation14], 1 }
 0x4de   :  { %828 = vsyncpa [#allocation9], 1 }
 0x4df   :  { %830 = vsyncpa [#allocation9 + $0x1], 1 }

// kernel: tpu_custom_call.1
= control target key start
LH: loop header
LB: loop body
LE: loop exit
PB: predicated region body
PF: predicated region fallthrough
CT: control target
= control target key end

     0   :  { %s1767_s0 = inlined_call_operand.hbm [shape: f32[2,8,128], index: 0, kind: input, shape index: {}]   ;;  %s1768_s1 = inlined_call_operand.hbm [shape: f32[2,8,128], index: 1, kind: input, shape index: {}]   ;;  %s1769_s2 = inlined_call_operand.hbm [shape: f32[128,128], index: 2, kind: input, shape index: {}]   ;;  %s1770_s3 = inlined_call_operand.vmem [shape: f32[1,128], index: 3, kind: input, shape index: {}]   ;;  %s1771_s4 = inlined_call_operand.hbm [shape: f32[128,256], index: 4, kind: input, shape index: {}]   ;;  %s1772_s5 = inlined_call_operand.vmem [shape: f32[1,256], index: 5, kind: input, shape index: {}]   ;;  %s1773_s6 = inlined_call_operand.hbm [shape: f32[2,8,128], index: 6, kind: output, shape index: {}]  }
   0x1   :  { %1780 = sst [smem:[#allocation24_spill]] %s1769_s2 }
   0x2   :  { %1781 = sst [smem:[#allocation25_spill]] %s1771_s4 }
   0x3   :  { %11 = vsyncpa [#allocation8], 0 }
   0x4   :  { %13 = vsyncpa [#allocation8 + $0x1], 0 }
   0x5   :  { %14 = vsyncpa [#allocation11], 0 }
   0x6   :  { %16 = vsyncpa [#allocation11 + $0x1], 0 }
   0x7   :  { %17 = vsyncpa [#allocation14], 0 }
   0x8   :  { %18 = vsyncpa [#allocation9], 0 }
   0x9   :  { %20 = vsyncpa [#allocation9 + $0x1], 0  ;;  %s1443_s21 = smov 0   ;;  %s1445_s22 = smov 0  }
   0xa   :  { %s1447_s23 = smov 0   ;;  %s1449_s24 = smov 0  }
   0xb   :  { %s1451_s25 = smov 0   ;;  %s1453_s26 = smov 0  }
   0xc LB: > { %1782 = sst [smem:[#allocation21_spill]] %s1388_s25  ;;  %s1474_s27 = sadd.s32 4294967295, %s1392_s26   ;;  %s1392_s26 = sphi %s1453_s26, %s26_s26   ;;  %s1388_s25 = sphi %s1451_s25, %s1805_s25   ;;  %s1384_s24 = sphi %s1449_s24, %s1804_s24   ;;  %s1380_s23 = sphi %s1447_s23, %s1808_s23   ;;  %s1376_s22 = sphi %s1445_s22, %s1807_s22   ;;  %s1372_s21 = sphi %s1443_s21, %s1806_s21  }
   0xd   : > { %s934_s28 = sadd.s32 4294967294, %s1392_s26   ;;  %p67_p0 = scmp.ne.s32.totalorder %s1376_s22, %s1372_s21 }
   0xe   : > { %p1774_p1 = scmp.eq.s32.totalorder %s1474_s27, 0  ;;  %p211_p3 = scmp.eq.s32.totalorder %s934_s28, 1 }
   0xf   : > { %p935_p5 = scmp.ge.s32.totalorder %s1392_s26, 1  ;;  %p218_p7 = scmp.lt.s32.totalorder %s1392_s26, 3 }
  0x10   : > { %p1483_p4 = por %p1774_p1, %p67_p0  ;;  %p1488_p6 = por %p211_p3, %p67_p0 }
  0x11   : > { %p1493_p8 = pnand %p935_p5, %p218_p7  ;;  %s1394_s8 = smov [#allocation12]  }
  0x12   : > { %s1783_s29 = scalar_select %p1483_p4, 1, 0 }
  0x13   : > { %s1784_s30 = scalar_select %p1488_p6, 1, 0 }
  0x14   : > { %s1785_s7 = scalar_select %p1493_p8, 1, 0 }
  0x15   : > { %s230_s9 = sshll.u32 %s1394_s8, 4  ;;  %p1091_p9 = pneg %p1493_p8  ;;  %s1497_s9 = int_to_ptr.vmem [resolvable:$true] %s230_s9 }
  0x16   : > { %s1395_s11 = smov [#allocation13]   ;;  %s1787_s2 = sld [smem:[#allocation24_spill]] }
  0x17   : > { %p1504_p11 = pnand %p1091_p9, %p1774_p1  ;;  %s246_s12 = sshll.u32 %s1395_s11, 4  ;;  %s1508_s12 = int_to_ptr.vmem [resolvable:$true] %s246_s12 }
  0x19   : > { %p1184_p13 = pneg %p1504_p11 }
  0x1c   : > { %s1182_s15 = scalar_lea.hbm %s1787_s2, 2048 }
  0x1d   : > { %p1183_p12 = scmp.ne.s32.totalorder %s1787_s2, %s1182_s15  ;;  %p1189_p5 = scmp.lt.u32.totalorder %s1182_s15, %s1787_s2 }
  0x1f   : > { %p1185_p0 = pnand %p1184_p13, %p1183_p12 }
  0x21   : > { %p1186_p3 = pneg %p1185_p0 }
  0x23   : > { %p1191_p7 = pnand %p1189_p5, %p1186_p3 }
  0x25   : > { %1194 = shalt.err (!%p1191_p7)
}
  0x26   : > { %s1195_s20 = scalar_lea.vmem %s1497_s9, 2048  ;;  %p1203_p2 = scmp.lt.s32.totalorder %s1497_s9, %s1497_s9 }
  0x27   : > { %p1196_p9 = scmp.ne.s32.totalorder %s1497_s9, %s1195_s20  ;;  %p1204_p12 = scmp.lt.s32.totalorder %s1195_s20, %s1195_s20 }
  0x29   : > { %p1198_p10 = pnand %p1196_p9, %p1184_p13  ;;  %p1205_p0 = por %p1204_p12, %p1203_p2 }
  0x2b   : > { %p1199_p1 = pneg %p1198_p10 }
  0x2d   : > { %p1206_p6 = pnand %p1205_p0, %p1199_p1 }
  0x2f   : > { %1209 = shalt.err (!%p1206_p6)
}
  0x30   : > { %s1396_s28 = smov 128   ;;  %s1397_s8 = smov 8  }
  0x31   : > { %1094 = dma.hbm_to_vmem [thread:$0]  (!%p1504_p11), %s1787_s2, 2048, %s1497_s9, [#allocation11], %s1396_s28, %s1396_s28, %s1397_s8  }
  0x32   : > { %s1788_s4 = sld [smem:[#allocation25_spill]] }
  0x38   : > { %s1210_s16 = scalar_lea.hbm %s1788_s4, 4096 }
  0x39   : > { %p1211_p2 = scmp.ne.s32.totalorder %s1788_s4, %s1210_s16  ;;  %p1217_p10 = scmp.lt.u32.totalorder %s1210_s16, %s1788_s4 }
  0x3b   : > { %p1213_p1 = pnand %p1211_p2, %p1184_p13 }
  0x3d   : > { %p1214_p6 = pneg %p1213_p1 }
  0x3f   : > { %p1219_p3 = pnand %p1217_p10, %p1214_p6 }
  0x41   : > { %1222 = shalt.err (!%p1219_p3)
}
  0x42   : > { %s1223_s9 = scalar_lea.vmem %s1508_s12, 4096  ;;  %p1231_p12 = scmp.lt.s32.totalorder %s1508_s12, %s1508_s12 }
  0x43   : > { %p1224_p5 = scmp.ne.s32.totalorder %s1508_s12, %s1223_s9  ;;  %p1232_p0 = scmp.lt.s32.totalorder %s1223_s9, %s1223_s9 }
  0x45   : > { %p1226_p7 = pnand %p1224_p5, %p1184_p13  ;;  %p1233_p2 = por %p1232_p0, %p1231_p12 }
  0x47   : > { %p1227_p9 = pneg %p1226_p7 }
  0x49   : > { %p1234_p1 = pnand %p1233_p2, %p1227_p9 }
  0x4b   : > { %1237 = shalt.err (!%p1234_p1)
}
  0x4c   : > { %s1398_s28 = smov 256   ;;  %s1399_s8 = smov 16  }
  0x4d   : > { %1097 = dma.hbm_to_vmem [thread:$0]  (!%p1504_p11), %s1788_s4, 4096, %s1508_s12, [#allocation14], %s1398_s28, %s1398_s28, %s1399_s8  }
  0x4e   : > { %s45_s14 = sadd.s32 1, %s1388_s25  ;;  %s54_s15 = sadd.s32 1, %s1380_s23 }
  0x4f   : > { %p47_p13 = scmp.ge.s32.totalorder %s45_s14, 2  ;;  %p61_p6 = scmp.ne.s32.totalorder %s1380_s23, %s1376_s22 }
  0x50   : > { %p62_p10 = scmp.eq.s32.totalorder %s1392_s26, 0  ;;  %p1111_p3 = scmp.lt.s32.totalorder %s1392_s26, 2 }
  0x51   : > { %s1810_s14 = smov (%p47_p13, %s45_s14), 0  ;;  %p1790_p7 = scmp.eq.s32.totalorder %s1474_s27, 1 }
  0x52   : > { %1789 = sst [smem:[#allocation22_spill]] %s1810_s14  ;;  %p63_p5 = por %p62_p10, %p61_p6 }
  0x53   : > { %p1572_p9 = por %p1790_p7, %p61_p6  ;;  %s49_s10 = ssub.s32 %s1388_s25, %s1810_s14 }
  0x54   : > { %s263_s17 = sand.u32 1, %s1380_s23   ;;  %p52_p12 = scmp.eq.s32.totalorder %s49_s10, 0 }
  0x55   : > { %s1791_s16 = scalar_select %p1572_p9, 1, 0 }
  0x56   : > { %s1579_s12 = sshll.u32 %s263_s17, 3  ;;  %s940_s18 = sshll.u32 %s1388_s25, 7 }
  0x57   : > { %s1583_s19 = scalar_select %p52_p12, %s1380_s23, %s54_s15  }
  0x58   : > { %s1588_s28 = scalar_lea.hbm %s1767_s0, %s940_s18  ;;  %s267_s8 = scalar_lea.vmem [#allocation7], %s1579_s12 }
  0x59   : > { %1792 = sst [smem:[#allocation23_spill]] %s1583_s19  ;;  %s275_s11 = sshll.u32 %s267_s8, 4  ;;  %s1597_s11 = int_to_ptr.vmem [resolvable:$true] %s275_s11 }
  0x5a   : > { %p1593_p11 = pnand %p1111_p3, %p63_p5  ;;  %s1602_s20 = scalar_lea.hbm %s1768_s1, %s940_s18 }
  0x5b   : > { %s264_s9 = scalar_lea.sflag [#allocation8], %s263_s17  ;;  %s1238_s2 = scalar_lea.hbm %s1588_s28, 128 }
  0x5c   : > { %p1239_p0 = scmp.ne.s32.totalorder %s1588_s28, %s1238_s2  ;;  %p1240_p2 = pneg %p1593_p11 }
  0x5d   : > { %s1243_s14 = scalar_lea.hbm %s1767_s0, 256  ;;  %p1244_p6 = scmp.lt.u32.totalorder %s1588_s28, %s1767_s0 }
  0x5e   : > { %p1241_p1 = pnand %p1240_p2, %p1239_p0  ;;  %p1245_p10 = scmp.lt.u32.totalorder %s1243_s14, %s1238_s2 }
  0x5f   : > { %p1247_p5 = scmp.lt.u32.totalorder %s1238_s2, %s1588_s28 }
  0x60   : > { %p1242_p13 = pneg %p1241_p1  ;;  %p1246_p3 = por %p1245_p10, %p1244_p6 }
  0x62   : > { %p1248_p7 = por %p1247_p5, %p1246_p3 }
  0x64   : > { %p1249_p12 = pnand %p1248_p7, %p1242_p13 }
  0x66   : > { %1252 = shalt.err (!%p1249_p12)
}
  0x67   : > { %s1253_s17 = scalar_lea.vmem %s1597_s11, 128  ;;  %s1400_s4 = smov [#allocation7]  }
  0x68   : > { %p1254_p0 = scmp.ne.s32.totalorder %s1597_s11, %s1253_s17  ;;  %s1258_s18 = sshll.u32 %s1400_s4, 4  ;;  %s1259_s18 = int_to_ptr.vmem [resolvable:$false] %s1258_s18 }
  0x69   : > { %s1260_s25 = scalar_lea.vmem %s1259_s18, 256  ;;  %p1261_p4 = scmp.lt.s32.totalorder %s1597_s11, %s1259_s18 }
  0x6a   : > { %p1256_p1 = pnand %p1254_p0, %p1240_p2  ;;  %p1262_p6 = scmp.lt.s32.totalorder %s1260_s25, %s1253_s17 }
  0x6c   : > { %p1257_p9 = pneg %p1256_p1  ;;  %p1263_p10 = por %p1262_p6, %p1261_p4 }
  0x6e   : > { %p1264_p3 = pnand %p1263_p10, %p1257_p9 }
  0x70   : > { %1267 = shalt.err (!%p1264_p3)
}
  0x71   : > { %1101 = dma.hbm_to_vmem [thread:$0]  (!%p1593_p11), %s1588_s28, 128, %s1597_s11, %s264_s9  }
  0x72   : > { %s282_s2 = sand.u32 1, %s1392_s26   ;;  %s286_s14 = scalar_lea.vmem [#allocation10], %s1579_s12 }
  0x73   : > { %s294_s19 = sshll.u32 %s286_s14, 4  ;;  %s283_s15 = scalar_lea.sflag [#allocation11], %s282_s2  ;;  %s295_s19 = int_to_ptr.vmem [resolvable:$true] %s294_s19 }
  0x74   : > { %s1268_s10 = scalar_lea.hbm %s1602_s20, 128  ;;  %s1273_s4 = scalar_lea.hbm %s1768_s1, 256 }
  0x75   : > { %p1269_p4 = scmp.ne.s32.totalorder %s1602_s20, %s1268_s10  ;;  %p1274_p5 = scmp.lt.u32.totalorder %s1602_s20, %s1768_s1 }
  0x76   : > { %p1275_p7 = scmp.lt.u32.totalorder %s1273_s4, %s1268_s10  ;;  %p1277_p0 = scmp.lt.u32.totalorder %s1268_s10, %s1602_s20 }
  0x77   : > { %p1271_p9 = pnand %p1269_p4, %p1240_p2 }
  0x78   : > { %p1276_p12 = por %p1275_p7, %p1274_p5 }
  0x79   : > { %p1272_p13 = pneg %p1271_p9 }
  0x7a   : > { %p1278_p1 = por %p1277_p0, %p1276_p12 }
  0x7c   : > { %p1279_p6 = pnand %p1278_p1, %p1272_p13 }
  0x7e   : > { %1282 = shalt.err (!%p1279_p6)
}
  0x7f   : > { %s1283_s12 = scalar_lea.vmem %s295_s19, 128  ;;  %s1401_s28 = smov [#allocation10]  }
  0x80   : > { %p1284_p10 = scmp.ne.s32.totalorder %s295_s19, %s1283_s12  ;;  %s1288_s11 = sshll.u32 %s1401_s28, 4  ;;  %s1289_s11 = int_to_ptr.vmem [resolvable:$false] %s1288_s11 }
  0x81   : > { %s1290_s9 = scalar_lea.vmem %s1289_s11, 256  ;;  %p1291_p9 = scmp.lt.s32.totalorder %s295_s19, %s1289_s11 }
  0x82   : > { %p1286_p3 = pnand %p1284_p10, %p1240_p2  ;;  %p1292_p8 = scmp.lt.s32.totalorder %s1290_s9, %s1283_s12 }
  0x84   : > { %p1287_p4 = pneg %p1286_p3  ;;  %p1293_p5 = por %p1292_p8, %p1291_p9 }
  0x86   : > { %p1294_p7 = pnand %p1293_p5, %p1287_p4 }
  0x88   : > { %1297 = shalt.err (!%p1294_p7)
}
  0x89   : > { %1104 = dma.hbm_to_vmem [thread:$0]  (!%p1593_p11), %s1602_s20, 128, %s295_s19, %s283_s15  }
  0x8a   : > { %p1794_p13 = scmp.ne.s32.totalorder %s1785_s7, 0 }
  0x8b   : > { %s1653_s2 = sand.u32 (!%p1794_p13), 1, %s1376_s22   ;;  %p1795_p8 = scmp.ne.s32.totalorder (!%p1794_p13), %s1783_s29, 0 }
  0x8c   : > { %303 = sbr.rel (%p1794_p13) target bundleno = 1225 (0x4c9), region = 44  ;;  %s1656_s14 = sshll.u32 (!%p1794_p13), %s1653_s2, 3 }
  0x8d   : > { %s306_s10 = scalar_lea.sflag (!%p1794_p13), [#allocation8], %s1653_s2  ;;  %s309_s8 = scalar_lea.vmem (!%p1794_p13), [#allocation7], %s1656_s14 }
  0x93   : > { %1351 = dma.done.wait (%p1795_p8), %s306_s10, 128  }
  0x94   : > { %1353 = vsyncadd (%p1795_p8), %s306_s10, 4294967168  ;;  %s314_s7 = sand.u32 1, %s1474_s27   ;;  %s318_s20 = scalar_lea.vmem [#allocation10], %s1656_s14 }
  0x95   : > { %s315_s13 = scalar_lea.sflag [#allocation11], %s314_s7 }
  0x96   : > { %1355 = dma.done.wait (%p1795_p8), %s315_s13, 128  }
  0x97   : > { %1357 = vsyncadd (%p1795_p8), %s315_s13, 4294967168  ;;  %p1796_p11 = scmp.eq.s32.totalorder %s1474_s27, 0 }
  0x99   : > { %1359 = dma.done.wait (%p1796_p11), [#allocation11], 2048   ;;  %p1797_p2 = pmov %p1796_p11 }
  0x9b   : > { %1361 = vsyncadd (%p1797_p2), [#allocation11], 4294965248  ;;  %p1798_p12 = pmov %p1797_p2 }
  0x9c   : > { %p1799_p0 = pmov %p1797_p2 }
  0x9d   : > { %1363 = dma.done.wait (%p1798_p12), [#allocation14], 4096  }
  0x9e   : > { %1365 = vsyncadd (%p1799_p0), [#allocation14], 4294963200  ;;  %v1402_v0 = vmov 0.0|0.0   ;;  %v1403_v1 = vmov 0.0   ;;  %vm1404_vm0 = vmmov 0   ;;  %v469_v2 = vld [vmem:[#allocation13 + $0x8] sm:$0xff] }
  0x9f   : > { %1021 = vmatprep.subr.bf16.mxu0 %v1402_v0  ;;  %576 = vmatprep.mubr.f32.mxu1 %v1403_v1  ;;  %v471_v3 = vld [vmem:[#allocation13 + $0x18] sm:$0xff]  ;;  %v468_v4 = vld [vmem:[#allocation13] sm:$0xff]  ;;  %v470_v6 = vld [vmem:[#allocation13 + $0x10] sm:$0xff]  ;;  %vm459_vm1 = vcmask 7168   ;;  %vm665_vm2 = vcmask 64512   ;;  %s952_s17 = sshll.u32 %s1384_s24, 7 }
  0xa0   : > { %1008 = vmatprep.mubr.msk.f32.mxu0 %vm1404_vm0, %v1403_v1  ;;  %v1045_v5 = vpack.c.bf16 %v471_v3, %v469_v2  ;;  %v365_v7 = vld [vmem:[#allocation12] sm:$0xff]  ;;  %v366_v8 = vld [vmem:[#allocation12 + $0x8] sm:$0xff]  ;;  %v1047_v9 = vpack.c.bf16 %v470_v6, %v468_v4  ;;  %v475_v12 = vld [vmem:[#allocation13 + $0x38] sm:$0xff]  ;;  %461 = vst.msk [vmem:[#allocation4] sm:$0xff] %vm459_vm1, %v1403_v1  ;;  %s359_s4 = scalar_lea.vmem [#allocation15], %s1656_s14  ;;  %s1718_s28 = scalar_lea.hbm %s1773_s6, %s952_s17 }
  0xa1   : > { %v1022_v10 = vpack.c.bf16 %v366_v8, %v365_v7  ;;  %v473_v11 = vld [vmem:[#allocation13 + $0x28] sm:$0xff]  ;;  %v472_v13 = vld [vmem:[#allocation13 + $0x20] sm:$0xff]  ;;  %v474_v15 = vld [vmem:[#allocation13 + $0x30] sm:$0xff]  ;;  %s803_s18 = sshll.u32 %s359_s4, 4  ;;  %s789_s11 = scalar_lea.sflag [#allocation9], %s1653_s2  ;;  %s1720_s18 = int_to_ptr.vmem [resolvable:$true] %s803_s18 }
  0xa2   : > { %1046 = vmatprep.subr.bf16.mxu1 %v1045_v5  ;;  %v1049_v14 = vpack.c.bf16 %v475_v12, %v473_v11  ;;  %v367_v16 = vld [vmem:[#allocation12 + $0x10] sm:$0xff]  ;;  %v368_v17 = vld [vmem:[#allocation12 + $0x18] sm:$0xff]  ;;  %v1051_v18 = vpack.c.bf16 %v474_v15, %v472_v13  ;;  %v477_v20 = vld [vmem:[#allocation13 + $0x48] sm:$0xff]  ;;  %s1298_s9 = scalar_lea.vmem %s1720_s18, 128  ;;  %p1800_p6 = scmp.ne.s32.totalorder %s1791_s16, 0 }
  0xa3   : > { %1048 = vmatpush1.bf16.msra.mxu1 %v1047_v9  ;;  %1023 = vmatpush3.bf16.msra.mxu0 %v1022_v10  ;;  %v1025_v19 = vpack.c.bf16 %v368_v17, %v367_v16  ;;  %v479_v21 = vld [vmem:[#allocation13 + $0x58] sm:$0xff]  ;;  %v476_v22 = vld [vmem:[#allocation13 + $0x40] sm:$0xff]  ;;  %v478_v24 = vld [vmem:[#allocation13 + $0x50] sm:$0xff]  ;;  %p1299_p1 = scmp.ne.s32.totalorder %s1720_s18, %s1298_s9  ;;  %s1407_s24 = smov [#allocation15]  }
  0xa4   : > { %1050 = vmatprep.subr.bf16.mxu1 %v1049_v14  ;;  %1024 = vmatprep.subr.bf16.mxu0 %v1402_v0  ;;  %v1053_v23 = vpack.c.bf16 %v479_v21, %v477_v20  ;;  %v369_v25 = vld [vmem:[#allocation12 + $0x20] sm:$0xff]  ;;  %v370_v26 = vld [vmem:[#allocation12 + $0x28] sm:$0xff]  ;;  %v483_v28 = vld [vmem:[#allocation13 + $0x78] sm:$0xff]  ;;  %v1055_v29 = vpack.c.bf16 %v478_v24, %v476_v22  ;;  %v502_v14 = vlaneseq  ;;  %s1302_s14 = sshll.u32 %s1407_s24, 4  ;;  %s1303_s14 = int_to_ptr.vmem [resolvable:$false] %s1302_s14 }
  0xa5   : > { %v481_v27 = vld [vmem:[#allocation13 + $0x68] sm:$0xff]  ;;  %v1028_v30 = vpack.c.bf16 %v370_v26, %v369_v25  ;;  %v480_v31 = vld [vmem:[#allocation13 + $0x60] sm:$0xff]  ;;  %v482_v33 = vld [vmem:[#allocation13 + $0x70] sm:$0xff]  ;;  %p1300_p10 = pnand %p1299_p1, %p1800_p6  ;;  %s1304_s10 = scalar_lea.vmem %s1303_s14, 256 }
  0xa6   : > { %v1057_v32 = vpack.c.bf16 %v483_v28, %v481_v27  ;;  %v371_v34 = vld [vmem:[#allocation12 + $0x30] sm:$0xff]  ;;  %v372_v35 = vld [vmem:[#allocation12 + $0x38] sm:$0xff]  ;;  %v485_v36 = vld [vmem:[#allocation13 + $0x88] sm:$0xff]  ;;  %v1059_v38 = vpack.c.bf16 %v482_v33, %v480_v31  ;;  %v1405_v28 = vmov -inf   ;;  %p1305_p4 = scmp.lt.s32.totalorder %s1720_s18, %s1303_s14  ;;  %p1306_p9 = scmp.lt.s32.totalorder %s1304_s10, %s1298_s9 }
  0xa7   : > { %1052 = vmatpush1.bf16.msra.mxu1 %v1051_v18  ;;  %1026 = vmatpush3.bf16.msra.mxu0 %v1025_v19  ;;  %v487_v37 = vld [vmem:[#allocation13 + $0x98] sm:$0xff]  ;;  %v1031_v39 = vpack.c.bf16 %v372_v35, %v371_v34  ;;  %v484_v40 = vld [vmem:[#allocation13 + $0x80] sm:$0xff]  ;;  %v486_v42 = vld [vmem:[#allocation13 + $0x90] sm:$0xff]  ;;  %460 = vst.msk [vmem:[#allocation3] sm:$0xff] %vm459_vm1, %v1405_v28  ;;  %p1301_p3 = pneg %p1300_p10 }
  0xa8   : > { %1054 = vmatprep.subr.bf16.mxu1 %v1053_v23  ;;  %1027 = vmatprep.subr.bf16.mxu0 %v1402_v0  ;;  %v1061_v41 = vpack.c.bf16 %v487_v37, %v485_v36  ;;  %v373_v43 = vld [vmem:[#allocation12 + $0x40] sm:$0xff]  ;;  %v374_v44 = vld [vmem:[#allocation12 + $0x48] sm:$0xff]  ;;  %v491_v46 = vld [vmem:[#allocation13 + $0xb8] sm:$0xff]  ;;  %v1063_v47 = vpack.c.bf16 %v486_v42, %v484_v40  ;;  %p1307_p5 = por %p1306_p9, %p1305_p4 }
  0xa9   : > { %v489_v45 = vld [vmem:[#allocation13 + $0xa8] sm:$0xff]  ;;  %v1034_v48 = vpack.c.bf16 %v374_v44, %v373_v43  ;;  %v488_v49 = vld [vmem:[#allocation13 + $0xa0] sm:$0xff]  ;;  %v490_v51 = vld [vmem:[#allocation13 + $0xb0] sm:$0xff] }
  0xaa   : > { %v1065_v50 = vpack.c.bf16 %v491_v46, %v489_v45  ;;  %v375_v52 = vld [vmem:[#allocation12 + $0x50] sm:$0xff]  ;;  %v376_v53 = vld [vmem:[#allocation12 + $0x58] sm:$0xff]  ;;  %v493_v54 = vld [vmem:[#allocation13 + $0xc8] sm:$0xff]  ;;  %v1067_v56 = vpack.c.bf16 %v490_v51, %v488_v49  ;;  %p1308_p7 = pnand %p1307_p5, %p1301_p3 }
  0xab   : > { %1056 = vmatpush1.bf16.msra.mxu1 %v1055_v29  ;;  %1029 = vmatpush3.bf16.msra.mxu0 %v1028_v30  ;;  %v495_v55 = vld [vmem:[#allocation13 + $0xd8] sm:$0xff]  ;;  %v1037_v57 = vpack.c.bf16 %v376_v53, %v375_v52  ;;  %v492_v58 = vld [vmem:[#allocation13 + $0xc0] sm:$0xff]  ;;  %v494_v60 = vld [vmem:[#allocation13 + $0xd0] sm:$0xff] }
  0xac   : > { %1058 = vmatprep.subr.bf16.mxu1 %v1057_v32  ;;  %1030 = vmatprep.subr.bf16.mxu0 %v1402_v0  ;;  %v1069_v59 = vpack.c.bf16 %v495_v55, %v493_v54  ;;  %v377_v61 = vld [vmem:[#allocation12 + $0x60] sm:$0xff]  ;;  %v378_v62 = vld [vmem:[#allocation12 + $0x68] sm:$0xff]  ;;  %v499_v2 = vld [vmem:[#allocation13 + $0xf8] sm:$0xff]  ;;  %v1071_v3 = vpack.c.bf16 %v494_v60, %v492_v58  ;;  %v1406_v32 = vmov 0  }
  0xad   : > { %v497_v63 = vld [vmem:[#allocation13 + $0xe8] sm:$0xff]  ;;  %v1040_v4 = vpack.c.bf16 %v378_v62, %v377_v61  ;;  %v496_v5 = vld [vmem:[#allocation13 + $0xe0] sm:$0xff]  ;;  %v498_v7 = vld [vmem:[#allocation13 + $0xf0] sm:$0xff]  ;;  %1174 = vset.pattern.permute.xlu0 %v1406_v32  ;;  %1175 = vset.pattern.permute.xlu1 %v1406_v32 }
  0xae   : > { %v1073_v6 = vpack.c.bf16 %v499_v2, %v497_v63  ;;  %v379_v8 = vld [vmem:[#allocation12 + $0x70] sm:$0xff]  ;;  %v380_v9 = vld [vmem:[#allocation12 + $0x78] sm:$0xff]  ;;  %v1075_v10 = vpack.c.bf16 %v498_v7, %v496_v5  ;;  %v364_v13 = vld [vmem:[%s309_s8] sm:$0xff] }
  0xaf   : > { %1060 = vmatpush1.bf16.msra.mxu1 %v1059_v38  ;;  %1032 = vmatpush3.bf16.msra.mxu0 %v1031_v39  ;;  %v1043_v11 = vpack.c.bf16 %v380_v9, %v379_v8  ;;  %v467_v12 = vld [vmem:[%s318_s20] sm:$0xff] }
  0xb0   : > { %1062 = vmatprep.subr.bf16.mxu1 %v1061_v41  ;;  %1033 = vmatprep.subr.bf16.mxu0 %v1402_v0  ;;  %v500_v16 = vld [vmem:[%s1772_s5] sm:$0x3]  ;;  %v681_v43 = vld [vmem:[#allocation4] sm:$0xff] }
  0xb1   : > { %v949_v20 = vld [vmem:[%s1770_s3] ss:$0 sm:$0xff] }
  0xb2   : > { %v664_v33 = vld [vmem:[#allocation3] sm:$0xff] }
  0xb3   : > { %1064 = vmatpush1.bf16.msra.mxu1 %v1063_v47  ;;  %1035 = vmatpush3.bf16.msra.mxu0 %v1034_v48 }
  0xb4   : > { %1066 = vmatprep.subr.bf16.mxu1 %v1065_v50  ;;  %1036 = vmatprep.subr.bf16.mxu0 %v1402_v0 }
  0xb7   : > { %1068 = vmatpush1.bf16.msra.mxu1 %v1067_v56  ;;  %1038 = vmatpush3.bf16.msra.mxu0 %v1037_v57 }
  0xb8   : > { %1070 = vmatprep.subr.bf16.mxu1 %v1069_v59  ;;  %1039 = vmatprep.subr.bf16.mxu0 %v1402_v0 }
  0xbb   : > { %1072 = vmatpush1.bf16.msra.mxu1 %v1071_v3  ;;  %1041 = vmatpush3.bf16.msra.mxu0 %v1040_v4 }
  0xbc   : > { %1074 = vmatprep.subr.bf16.mxu1 %v1073_v6  ;;  %1042 = vmatprep.subr.bf16.mxu0 %v1402_v0  ;;  %v503_v0 = vshrl.u32 %v502_v14, 7 }
  0xbe   : > { %v504_v15 = vsub.s32 0, %v503_v0  ;;  %v508_v17 = vsub.s32 1, %v503_v0 }
  0xbf   : > { %1076 = vmatpush1.bf16.msra.mxu1 %v1075_v10  ;;  %1044 = vmatpush3.bf16.msra.mxu0 %v1043_v11 }
  0xc0   : > { %1011 = vmatprep.subr.mxu0 %v1403_v1  ;;  %1016 = vmatprep.subr.mxu1 %v1403_v1  ;;  %v505_v18 = vrot.slane %v500_v16, %v504_v15  ;;  %v509_v19 = vrot.slane %v500_v16, %v508_v17 }
  0xc2   : > { %577 = vmatmul.mubr.f32.vlgmr.msra.gmra.mrb[0].mxu1 %v467_v12  ;;  %1009 = vmatmul.mubr.f32.vlgmr.msra.gmra.mrb[0].mxu0 %v364_v13 }
  0xc3   : > { %1013 = vmatprep.mubr.msk.f32.mxu0 %vm1404_vm0, %v1403_v1  ;;  %1018 = vmatprep.mubr.msk.f32.mxu1 %vm1404_vm0, %v1403_v1 }
 0x195   : > { %v578_v21 = vpop.f32.mrb[0].mxu1  ;;  %v454_v22 = vpop.f32.mrb[0].mxu0 }
 0x196   : > { %v579_v23 = vadd.f32 %v578_v21, %v505_v18  ;;  %v580_v24 = vpop.f32.mrb[1].mxu1  ;;  %v1010_v25 = vpop.f32.mrb[1].mxu0  ;;  %v455_v27 = vadd.f32 %v949_v20, %v454_v22 }
 0x197   : > { %v581_v26 = vadd.f32 %v580_v24, %v509_v19 }
 0x198   : > { %1012 = vmatpush3.xpose.msra.mxu0 %v579_v23 }
 0x199   : > { %1017 = vmatpush3.msra.mxu1 %v581_v26 }
 0x19b   : > { %1014 = vmatmul.mubr.f32.vlgmr.msra.gmra.mrb[2].mxu0 %v455_v27 }
 0x26e   : > { %v660_v29 = vpop.f32.mrb[2].mxu0 }
 0x26f   : > { %v1015_v30 = vpop.f32.mrb[3].mxu0  ;;  %v666_v31 = vsel %vm665_vm2, %v660_v29, -inf }
 0x270   : > { %667 = vmax.xlane.f32.xlu0 %v666_v31 }
 0x2fd   : > { %v668_v34 = vpop.xlane.xlu0 %667 }
 0x2fe   : > { %v669_v35 = vmax.f32 %v664_v33, %v668_v34 }
 0x300   : > { %v670_v36 = vsub.f32 %v664_v33, %v669_v35  ;;  %771 = vst.msk [vmem:[#allocation3] sm:$0xff] %vm459_vm1, %v669_v35  ;;  %675 = vperm.xlu0 %1174, %v669_v35  }
 0x302   : > { %v671_v41 = vmul.f32 1.442695, %v670_v36 }
 0x37f   : > { %v676_v37 = vpop.permute.xlu0 %675 }
 0x380   : > { %v678_v38 = vsub.f32 %v660_v29, %v676_v37 }
 0x382   : > { %v679_v39 = vmul.f32 1.442695, %v678_v38 }
 0x384   : > { %1176 = vpow2.f32 %v679_v39 }
 0x385   : > { %1178 = vpow2.f32 %v671_v41 }
 0x38e   : > { %v1177_v1 = vpop.eup %1176 }
 0x38f   : > { %1019 = vmatmul.mubr.msk.f32.vlgmr.msra.gmra.mrb[2].mxu1 %vm665_vm2, %v1177_v1  ;;  %v683_v40 = vsel %vm665_vm2, %v1177_v1, 0.0  ;;  %v1179_v42 = vpop.eup %1178 }
 0x390   : > { %684 = vadd.xlane.f32.xlu1 %v683_v40  ;;  %v682_v44 = vmul.f32 %v1179_v42, %v681_v43 }
 0x3a1   : > { %692 = vperm.xlu1 %1175, %v1179_v42  }
 0x41d   : > { %v685_v45 = vpop.xlane.xlu1 %684 }
 0x41e   : > { %v686_v46 = vadd.f32 %v685_v45, %v682_v44 }
 0x420   : > { %688 = vst.msk [vmem:[#allocation4] sm:$0xff] %vm459_vm1, %v686_v46 }
 0x421   : > { %v693_v54 = vpop.permute.xlu1 %692 }
 0x422   : > { %v695_v55 = vmul.f32 0.0, %v693_v54 }
 0x427   : > { %v775_v47 = vld [vmem:[#allocation4] sm:$0xff] }
 0x428   : > { %1180 = vrcp.f32 %v775_v47 }
 0x432   : > { %v1181_v48 = vpop.eup %1180 }
 0x433   : > { %v777_v49 = vmul.f32 %v1181_v48, %v775_v47 }
 0x435   : > { %v778_v50 = vsub.f32 2.0, %v777_v49 }
 0x437   : > { %v779_v51 = vmul.f32 %v1181_v48, %v778_v50 }
 0x439   : > { %783 = vperm.xlu1 %1175, %v779_v51  }
 0x462   : > { %v765_v52 = vpop.f32.mrb[2].mxu1 }
 0x463   : > { %v1020_v53 = vpop.f32.mrb[3].mxu1  ;;  %v769_v56 = vadd.f32 %v765_v52, %v695_v55 }
 0x4b8   : > { %v784_v57 = vpop.permute.xlu1 %783 }
 0x4b9   : > { %v786_v58 = vmul.f32 %v784_v57, %v769_v56 }
 0x4bb   : > { %787 = vst [vmem:[%s359_s4] sm:$0xff] %v786_v58 }
 0x4bc   : > { %1311 = shalt.err (!%p1308_p7)
}
 0x4bd   : > { %s1312_s2 = scalar_lea.hbm %s1718_s28, 128  ;;  %s1316_s13 = scalar_lea.hbm %s1773_s6, 256 }
 0x4be   : > { %p1313_p13 = scmp.ne.s32.totalorder %s1718_s28, %s1312_s2  ;;  %p1317_p2 = scmp.lt.u32.totalorder %s1718_s28, %s1773_s6 }
 0x4bf   : > { %p1318_p12 = scmp.lt.u32.totalorder %s1316_s13, %s1312_s2  ;;  %p1320_p1 = scmp.lt.u32.totalorder %s1312_s2, %s1718_s28 }
 0x4c0   : > { %p1314_p8 = pnand %p1313_p13, %p1800_p6 }
 0x4c1   : > { %p1319_p0 = por %p1318_p12, %p1317_p2 }
 0x4c2   : > { %p1315_p11 = pneg %p1314_p8 }
 0x4c3   : > { %p1321_p10 = por %p1320_p1, %p1319_p0 }
 0x4c5   : > { %p1322_p3 = pnand %p1321_p10, %p1315_p11 }
 0x4c7   : > { %1325 = shalt.err (!%p1322_p3)
}
 0x4c8   : > { %1089 = dma.vmem_to_hbm [thread:$0]  (%p1800_p6), %s1720_s18, 128, %s1718_s28, %s789_s11  }
 0x4c9 PF: > { %s815_s29 = sand.u32 1, %s1372_s21   ;;  %p1801_p4 = scmp.ne.s32.totalorder %s1784_s30, 0 }
 0x4ca   : > { %p1802_p9 = scmp.ge.s32.totalorder %s1392_s26, 2  ;;  %s816_s19 = scalar_lea.sflag [#allocation9], %s815_s29 }
 0x4cc   : > { %p1106_p5 = pnand %p1802_p9, %p1801_p4 }
 0x4ce   : > { %1367 = dma.done.wait (!%p1106_p5), %s816_s19, 128  }
 0x4cf   : > { %1369 = vsyncadd (!%p1106_p5), %s816_s19, 4294967168  ;;  %s26_s26 = sadd.s32 1, %s1392_s26   ;;  %s1803_s16 = sld [smem:[#allocation23_spill]] }
 0x4d0   : > { %p23_p7 = scmp.ge.s32.totalorder %s26_s26, 4   ;;  %s1804_s24 = sld [smem:[#allocation21_spill]] }
 0x4d1   : > { %s1805_s25 = sld [smem:[#allocation22_spill]]  ;;  %s1806_s21 = smov %s1376_s22 }
 0x4d2   : > { %s1807_s22 = smov %s1380_s23  ;;  %25 = sbr.rel (!%p23_p7) target bundleno = 12 (0xc), region = 124 }
 0x4d5   : > { %s1808_s23 = smov %s1803_s16 }
 0x4d9   :  { %821 = vsyncpa [#allocation8], 1 }
 0x4da   :  { %823 = vsyncpa [#allocation8 + $0x1], 1 }
 0x4db   :  { %824 = vsyncpa [#allocation11], 1 }
 0x4dc   :  { %826 = vsyncpa [#allocation11 + $0x1], 1 }
 0x4dd   :  { %827 = vsyncpa [#allocation14], 1 }
 0x4de   :  { %828 = vsyncpa [#allocation9], 1 }
 0x4df   :  { %830 = vsyncpa [#allocation9 + $0x1], 1 }

</bundles_post_ra>
